<compile_context>
chip_gen: v6e
topology: v6e:2x2x1
jax: 0.10.0
libtpu: 0.0.40
codegen_flags: <defaults>
</compile_context>

<pallas_src>
import functools

import jax
import jax.numpy as jnp
from jax import lax
from jax.experimental import pallas as pl
from jax.experimental.pallas import tpu as pltpu


_VMEM_CAP = 128 * 1024 * 1024  # upper clamp; re-derive per generation (v7x: 64 MiB).


# ----------------------------- tiled matmul ---------------------------------
def _matmul_kernel(x_ref, w_ref, o_ref, acc_ref):
    @pl.when(pl.program_id(2) == 0)
    def _():
        acc_ref[...] = jnp.zeros_like(acc_ref)

    acc_ref[...] += jnp.dot(
        x_ref[...], w_ref[...], preferred_element_type=jnp.float32
    )

    @pl.when(pl.program_id(2) == pl.num_programs(2) - 1)
    def _():
        o_ref[...] = acc_ref[...].astype(o_ref.dtype)


def _pick_tile(dim, preferred, align):
    """Largest `align`-aligned divisor of `dim` that is <= `preferred`.

    Never silently returns a whole-matrix tile for a large non-divisible dim
    (which would blow VMEM, esp. on v7x) unless no aligned divisor exists.
    """
    if dim <= preferred:
        return dim
    t = (preferred // align) * align
    while t >= align:
        if dim % t == 0:
            return t
        t -= align
    return dim


def linear(x, w_t, *, tm=256, tn=256, tk=512):
    """x: [M, K] @ w_t: [K, N] -> [M, N] (weights pre-transposed to [in, out])."""
    M, K = x.shape
    K2, N = w_t.shape
    assert K == K2
    tm = _pick_tile(M, tm, 8)
    tn = _pick_tile(N, tn, 128)
    tk = _pick_tile(K, tk, 128)
    itemsize = jnp.dtype(x.dtype).itemsize
    vmem = min(
        _VMEM_CAP,
        2 * (2 * (tm * tk + tk * tn + tm * tn) * itemsize + tm * tn * 4) + (8 << 20),
    )
    return pl.pallas_call(
        _matmul_kernel,
        out_shape=jax.ShapeDtypeStruct((M, N), x.dtype),
        grid=(M // tm, N // tn, K // tk),
        in_specs=[
            pl.BlockSpec((tm, tk), lambda i, j, k: (i, k)),
            pl.BlockSpec((tk, tn), lambda i, j, k: (k, j)),
        ],
        out_specs=pl.BlockSpec((tm, tn), lambda i, j, k: (i, j)),
        scratch_shapes=[pltpu.VMEM((tm, tn), jnp.float32)],
        compiler_params=pltpu.CompilerParams(
            dimension_semantics=("parallel", "parallel", "arbitrary"),
            vmem_limit_bytes=vmem,
        ),
    )(x, w_t)


# --------------------------- neox rotary helper ------------------------------
def _neox_rope(x, cos_full, sin_rot):
    """x*[cos,cos] + rotate_half(x)*[-sin,sin]; all args full head width, f32."""
    half = x.shape[-1] // 2
    x_rot = jnp.concatenate([x[:, half:], x[:, :half]], axis=-1)
    return x * cos_full + x_rot * sin_rot


# ------------------------- rotary on K (neox) --------------------------------
def _rope_k_kernel(k_ref, cos_ref, sin_ref, o_ref, *, head_size):
    hd = head_size
    n_kv = k_ref.shape[1] // hd
    cosf = cos_ref[...].astype(jnp.float32)
    sinr = sin_ref[...].astype(jnp.float32)
    for h in range(n_kv):
        base = h * hd
        kh = k_ref[:, base:base + hd].astype(jnp.float32)
        o_ref[:, base:base + hd] = _neox_rope(kh, cosf, sinr).astype(o_ref.dtype)


def rope_k(qkv, cos_full, sin_rot, num_heads, num_kv_heads, head_size, block_t=256):
    """Rotates the K columns of the fused qkv output -> lane-dense [T, nkv*hd] slab.

    One grid step processes all kv heads of a block_t-token slab (HBM-bound
    kernel, so big lane-dense blocks)."""
    T = qkv.shape[0]
    hd = head_size
    G = num_heads // num_kv_heads
    kv_width = num_kv_heads * hd
    block_t = _pick_tile(T, block_t, 8)
    kernel = functools.partial(_rope_k_kernel, head_size=hd)
    return pl.pallas_call(
        kernel,
        out_shape=jax.ShapeDtypeStruct((T, kv_width), qkv.dtype),
        grid=(T // block_t,),
        in_specs=[
            # K region of qkv starts at column num_heads*hd, i.e. block-column
            # index G in (num_kv_heads*hd)-wide units.
            pl.BlockSpec((block_t, kv_width), lambda ti: (ti, G)),
            pl.BlockSpec((block_t, hd), lambda ti: (ti, 0)),
            pl.BlockSpec((block_t, hd), lambda ti: (ti, 0)),
        ],
        out_specs=pl.BlockSpec((block_t, kv_width), lambda ti: (ti, 0)),
        compiler_params=pltpu.CompilerParams(
            dimension_semantics=("parallel",)
        ),
    )(qkv, cos_full, sin_rot)


# -------------------- KV-cache writeback (reshape_and_cache) -----------------
def _cache_update_kernel(k_new_ref, v_new_ref, slots_ref, ck_in, cv_in,
                         ck_out, cv_out, sems, *, depth):
    del ck_in, cv_in  # aliased into the outputs; never read here
    n_tokens = k_new_ref.shape[0]

    def k_copy(i, ring):
        return pltpu.make_async_copy(
            k_new_ref.at[i], ck_out.at[slots_ref[i]], sems.at[0, ring])

    def v_copy(i, ring):
        return pltpu.make_async_copy(
            v_new_ref.at[i], cv_out.at[slots_ref[i]], sems.at[1, ring])

    def start(i):
        ring = i % depth
        k_copy(i, ring).start()
        v_copy(i, ring).start()

    def wait(i):
        ring = i % depth
        k_copy(i, ring).wait()
        v_copy(i, ring).wait()

    def prime(i, c):
        start(i)
        return c

    def steady(i, c):
        wait(i)
        start(i + depth)
        return c

    def drain(i, c):
        wait(i)
        return c

    # Ring of `depth` in-flight copies: overlap the per-token DMA latencies.
    lax.fori_loop(0, depth, prime, 0)
    lax.fori_loop(0, n_tokens - depth, steady, 0)
    lax.fori_loop(n_tokens - depth, n_tokens, drain, 0)


def reshape_and_cache(k_new, v_new, slots, cache_k, cache_v, *, depth=8):
    """Slot-indexed in-place scatter of this step's K/V rows into the paged cache.

    Caches are aliased in/out so only T rows of DMA happen, pipelined `depth`
    deep. Assumes unique slot indices.
    TODO(synk): on v7x, chunk k_new/v_new over ~512-token tiles instead of
    staging the whole prefill slab in VMEM, and coalesce contiguous slot runs.
    """
    depth = max(1, min(depth, k_new.shape[0]))
    kernel = functools.partial(_cache_update_kernel, depth=depth)
    out_shape = (
        jax.ShapeDtypeStruct(cache_k.shape, cache_k.dtype),
        jax.ShapeDtypeStruct(cache_v.shape, cache_v.dtype),
    )
    return pl.pallas_call(
        kernel,
        out_shape=out_shape,
        in_specs=[
            pl.BlockSpec(memory_space=pltpu.MemorySpace.VMEM),   # new K rows
            pl.BlockSpec(memory_space=pltpu.MemorySpace.VMEM),   # new V rows
            pl.BlockSpec(memory_space=pltpu.MemorySpace.SMEM),   # slots
            pl.BlockSpec(memory_space=pl.ANY),                   # cache K (aliased)
            pl.BlockSpec(memory_space=pl.ANY),                   # cache V (aliased)
        ],
        out_specs=(
            pl.BlockSpec(memory_space=pl.ANY),
            pl.BlockSpec(memory_space=pl.ANY),
        ),
        scratch_shapes=[pltpu.SemaphoreType.DMA((2, depth))],
        input_output_aliases={3: 0, 4: 1},
    )(k_new, v_new, slots, cache_k, cache_v)


# ----------------------- flash attention (prefill) ---------------------------
def _flash_attn_kernel(q_ref, k_ref, v_ref, cos_ref, sin_ref, o_ref,
                       q_scr, m_scr, l_scr, acc_scr, *, window_left):
    qi = pl.program_id(1)
    ki = pl.program_id(2)
    nk = pl.num_programs(2)

    tq = q_ref.shape[0]
    tk = k_ref.shape[0]
    hd = k_ref.shape[1]
    num_groups = q_ref.shape[1] // hd      # GQA group size sharing this kv head

    q_start = qi * tq
    k_start = ki * tk

    # Once per (kv head, q tile): fused neox RoPE on the Q tile (cos/sin already
    # carry the softmax scale) + init of the online-softmax state.
    @pl.when(ki == 0)
    def _init():
        cosf = cos_ref[...].astype(jnp.float32)
        sinr = sin_ref[...].astype(jnp.float32)
        for g in range(num_groups):
            base = g * hd
            qg = q_ref[:, base:base + hd].astype(jnp.float32)
            q_scr[:, base:base + hd] = _neox_rope(qg, cosf, sinr).astype(q_scr.dtype)
        m_scr[...] = jnp.full_like(m_scr, -jnp.inf)
        l_scr[...] = jnp.zeros_like(l_scr)
        acc_scr[...] = jnp.zeros_like(acc_scr)

    # Skip KV tiles that are entirely above the causal diagonal (and, with a
    # sliding window, entirely left of every query row's window).
    relevant = k_start <= q_start + tq - 1
    if window_left >= 0:
        relevant = jnp.logical_and(
            relevant, q_start - (k_start + tk - 1) <= window_left
        )

    @pl.when(relevant)
    def _compute():
        k = k_ref[...]                     # [tk, hd] (rotated), native dtype
        v = v_ref[...]                     # [tk, hd]

        def accumulate(masked):
            if masked:
                row = q_start + lax.broadcasted_iota(jnp.int32, (tq, tk), 0)
                col = k_start + lax.broadcasted_iota(jnp.int32, (tq, tk), 1)
                mask = col <= row
                if window_left >= 0:
                    mask = jnp.logical_and(mask, (row - col) <= window_left)
            # K / V tile is loaded once and reused by every query head of the group.
            for g in range(num_groups):
                base = g * hd
                q_g = q_scr[:, base:base + hd]              # RoPE'd + pre-scaled
                s = lax.dot_general(q_g, k, (((1,), (1,)), ((), ())),
                                    preferred_element_type=jnp.float32)  # [tq, tk]
                if masked:
                    s = jnp.where(mask, s, jnp.float32(-1e30))
                m_prev = m_scr[g]                           # [tq, 1]
                m_new = jnp.maximum(m_prev, jnp.max(s, axis=-1, keepdims=True))
                alpha = jnp.exp(m_prev - m_new)
                p = jnp.exp(s - m_new)
                if masked:
                    p = jnp.where(mask, p, jnp.float32(0.0))  # robust for fully-masked rows
                l_scr[g] = alpha * l_scr[g] + jnp.sum(p, axis=-1, keepdims=True)
                acc_scr[:, base:base + hd] = (
                    alpha * acc_scr[:, base:base + hd]
                    + jnp.dot(p.astype(v.dtype), v,
                              preferred_element_type=jnp.float32)
                )
                m_scr[g] = m_new

        # Build/apply the mask only on tiles that actually cross the diagonal
        # (or the sliding-window boundary); interior tiles take a fast path.
        needs_mask = k_start + tk - 1 > q_start
        if window_left >= 0:
            needs_mask = jnp.logical_or(
                needs_mask, q_start + tq - 1 - k_start > window_left
            )

        @pl.when(needs_mask)
        def _edge():
            accumulate(True)

        @pl.when(jnp.logical_not(needs_mask))
        def _interior():
            accumulate(False)

    # Finalize: normalize and write the lane-dense [tq, G*hd] output slab.
    @pl.when(ki == nk - 1)
    def _finalize():
        for g in range(num_groups):
            base = g * hd
            inv_l = 1.0 / l_scr[g]
            o_ref[:, base:base + hd] = (
                acc_scr[:, base:base + hd] * inv_l
            ).astype(o_ref.dtype)


def flash_attention(qkv, k_rot, cos_q, sin_q,
                    num_heads, num_kv_heads, head_size,
                    *, window_left=-1, tq=256, tk=256):
    """Causal (optionally sliding-window) GQA flash attention over one prefill.

    Q and V are read directly from the fused qkv projection output via
    column-offset BlockSpecs; output is a lane-dense [T, nh*hd] slab.
    Default tq=tk=256 fills the 256x256 MXUs on v6e/v7x; re-derive the VMEM
    budget per generation (128 on v5e is also fine)."""
    T = qkv.shape[0]
    hd = head_size
    G = num_heads // num_kv_heads
    tq = min(tq, T)
    tk = min(tk, T)
    assert T % tq == 0 and T % tk == 0

    def kv_block(qi, ki):
        # Clamp so fully-masked KV tiles reuse the previous block index and
        # Pallas elides the HBM->VMEM copy (compute there is skipped by pl.when).
        last = (qi * tq + tq - 1) // tk
        idx = jnp.minimum(ki, last)
        if window_left >= 0:
            first = jnp.maximum(qi * tq - window_left, 0) // tk
            idx = jnp.maximum(idx, first)
        return idx

    kernel = functools.partial(_flash_attn_kernel, window_left=window_left)

    itemsize = jnp.dtype(qkv.dtype).itemsize
    blocks = 2 * (2 * tq * G * hd + 2 * tk * hd + 2 * tq * hd) * itemsize
    scratch = tq * G * hd * itemsize + 2 * G * tq * 128 * 4 + tq * G * hd * 4
    temps = 8 * tq * tk * 4                     # [tq,tk] f32 softmax temporaries
    vmem = min(_VMEM_CAP, 2 * (blocks + scratch + temps) + (8 << 20))

    return pl.pallas_call(
        kernel,
        out_shape=jax.ShapeDtypeStruct((T, num_heads * hd), qkv.dtype),
        grid=(num_kv_heads, T // tq, T // tk),
        in_specs=[
            # Q columns of qkv for this kv group: [kv*G*hd, (kv+1)*G*hd)
            pl.BlockSpec((tq, G * hd), lambda kv, qi, ki: (qi, kv)),
            # rotated K slab (clamped to the relevant causal/window range)
            pl.BlockSpec((tk, hd), lambda kv, qi, ki: (kv_block(qi, ki), kv)),
            # V columns of qkv: offset (nh + nkv) in hd-wide block units
            pl.BlockSpec((tk, hd),
                         lambda kv, qi, ki: (kv_block(qi, ki),
                                             num_heads + num_kv_heads + kv)),
            pl.BlockSpec((tq, hd), lambda kv, qi, ki: (qi, 0)),   # cos (pre-scaled)
            pl.BlockSpec((tq, hd), lambda kv, qi, ki: (qi, 0)),   # sin (pre-scaled)
        ],
        out_specs=pl.BlockSpec((tq, G * hd), lambda kv, qi, ki: (qi, kv)),
        scratch_shapes=[
            pltpu.VMEM((tq, G * hd), qkv.dtype),     # RoPE'd + scaled Q tile
            pltpu.VMEM((G, tq, 1), jnp.float32),     # running max
            pltpu.VMEM((G, tq, 1), jnp.float32),     # running sum
            pltpu.VMEM((tq, G * hd), jnp.float32),   # output accumulator
        ],
        compiler_params=pltpu.CompilerParams(
            dimension_semantics=("parallel", "parallel", "arbitrary"),
            vmem_limit_bytes=vmem,
        ),
    )(qkv, k_rot, qkv, cos_q, sin_q)


# ------------------------------ forward glue ---------------------------------
def mistral_attention_forward(hidden_states, cos, sin, wqkv_t, wo_t,
                              kv_cache_k, kv_cache_v, slots,
                              num_heads, num_kv_heads, head_size,
                              window_size_left=-1, tq=256, tk=256):
    """Prefill forward of MistralAttention (single sequence, no LoRA adapters).

    hidden_states: [T, hidden]; cos/sin: [T, hd//2] (neox half-dim tables);
    wqkv_t/wo_t: pre-transposed [in, out] weights; kv caches: [slots, nkv, hd].
    TODO(synk): multi-sequence cu_seqlen_prefill batching, paged decode branch,
    LoRA adapter_data and prefill_cache_indices are out of scope.
    """
    T = hidden_states.shape[0]
    softmax_scale = head_size ** -0.5
    q_dim = num_heads * head_size
    kv_dim = num_kv_heads * head_size

    # Expanded rotary tables so RoPE is  x*cos_full + rotate_half(x)*sin_rot.
    cos_full = jnp.concatenate([cos, cos], axis=-1)          # [T, hd]
    sin_rot = jnp.concatenate([-sin, sin], axis=-1)          # [T, hd]
    # Q tables carry the softmax scale (one-time XLA multiply, saves a
    # full-tile VPU pass per (kv head, q tile) inside the attention kernel).
    cos_q = (cos_full * softmax_scale).astype(cos_full.dtype)
    sin_q = (sin_rot * softmax_scale).astype(sin_rot.dtype)

    # Fused Q/K/V projection (tiled matmul).
    qkv = linear(hidden_states, wqkv_t)                      # [T, (nh+2*nkv)*hd]

    # Rotary on K -> lane-dense [T, nkv*hd] slab consumed by attention + cache.
    # (Q rotary is fused inside the attention kernel.)
    k_rot = rope_k(qkv, cos_full, sin_rot, num_heads, num_kv_heads, head_size,
                   block_t=256)

    # paged_attention.reshape_and_cache: aliased in-place slot scatter.
    k_new = k_rot.reshape(T, num_kv_heads, head_size)
    v_new = qkv[:, q_dim + kv_dim:].reshape(T, num_kv_heads, head_size)
    kv_cache_k, kv_cache_v = reshape_and_cache(k_new, v_new, slots,
                                               kv_cache_k, kv_cache_v)

    # Causal (sliding-window) GQA flash attention over this prefill.
    attn = flash_attention(qkv, k_rot, cos_q, sin_q,
                           num_heads, num_kv_heads, head_size,
                           window_left=window_size_left, tq=tq, tk=tk)

    out = linear(attn, wo_t)                                  # o_proj
    return out, kv_cache_k, kv_cache_v


# ------------------------------ reference ------------------------------------
def _rope_ref(x, cos, sin):
    hd = x.shape[-1]
    x1, x2 = x[..., : hd // 2], x[..., hd // 2:]
    c, s = cos[:, None, :], sin[:, None, :]
    return jnp.concatenate([x1 * c - x2 * s, x2 * c + x1 * s], axis=-1)


def ref_forward(hidden_states, cos, sin, wqkv, wo,
                num_heads, num_kv_heads, head_size, window_left=-1):
    T = hidden_states.shape[0]
    scale = head_size ** -0.5
    qkv = hidden_states @ wqkv.T
    q_dim = num_heads * head_size
    kv_dim = num_kv_heads * head_size
    q = qkv[:, :q_dim].reshape(T, num_heads, head_size)
    k = qkv[:, q_dim:q_dim + kv_dim].reshape(T, num_kv_heads, head_size)
    v = qkv[:, q_dim + kv_dim:].reshape(T, num_kv_heads, head_size)
    q = _rope_ref(q, cos, sin)
    k_roped = _rope_ref(k, cos, sin)
    g = num_heads // num_kv_heads
    qh = q.transpose(1, 0, 2)
    kh = jnp.repeat(k_roped.transpose(1, 0, 2), g, axis=0)
    vh = jnp.repeat(v.transpose(1, 0, 2), g, axis=0)
    s = jnp.einsum("htd,hsd->hts", qh, kh) * scale
    row = jnp.arange(T)[:, None]
    col = jnp.arange(T)[None, :]
    mask = col <= row
    if window_left >= 0:
        mask = mask & ((row - col) <= window_left)
    s = jnp.where(mask[None], s, -1e30)
    p = jax.nn.softmax(s, axis=-1)
    o = jnp.einsum("hts,hsd->htd", p, vh)
    o = o.transpose(1, 0, 2).reshape(T, num_heads * head_size)
    return o @ wo.T, k_roped, v


# --------------------------------- main ---------------------------------------
if __name__ == "__main__":
    T = 512                    # total prefill tokens (single sequence)
    num_heads = 4
    num_kv_heads = 2           # GQA: group size 2
    head_size = 128            # Mistral-style head_dim
    hidden = 512
    num_slots = T + 32
    dtype = jnp.float32        # bf16 in production; kernels keep native dtype
    tq = tk = 256              # production-sized attention tiles

    key = jax.random.PRNGKey(0)
    k1, k2, k3, k4 = jax.random.split(key, 4)
    hidden_states = jax.random.normal(k1, (T, hidden), dtype)
    wqkv = jax.random.normal(
        k2, ((num_heads + 2 * num_kv_heads) * head_size, hidden), dtype) * 0.05
    wo = jax.random.normal(k3, (hidden, num_heads * head_size), dtype) * 0.05

    # Pre-transposed [in, out] weights, computed once outside the per-call path.
    wqkv_t = jnp.asarray(wqkv.T)
    wo_t = jnp.asarray(wo.T)

    # Rotary tables (rope_theta = 10000), neox half-dim layout: [T, hd//2].
    pos = jnp.arange(T, dtype=jnp.float32)
    inv_freq = 1.0 / (10000.0 ** (
        jnp.arange(0, head_size, 2, dtype=jnp.float32) / head_size))
    freqs = pos[:, None] * inv_freq[None, :]
    cos, sin = jnp.cos(freqs).astype(dtype), jnp.sin(freqs).astype(dtype)

    # KV cache [num_slots, nkv, hd]; slots = random permutation (scatter test).
    kv_cache_k = jnp.zeros((num_slots, num_kv_heads, head_size), dtype)
    kv_cache_v = jnp.zeros((num_slots, num_kv_heads, head_size), dtype)
    slots = jax.random.permutation(k4, num_slots)[:T].astype(jnp.int32)

    # Full (causal) prefill attention.
    out, cache_k, cache_v = mistral_attention_forward(
        hidden_states, cos, sin, wqkv_t, wo_t, kv_cache_k, kv_cache_v, slots,
        num_heads, num_kv_heads, head_size, window_size_left=-1, tq=tq, tk=tk,
    )
    jax.block_until_ready((out, cache_k, cache_v))

    out_ref, k_rot_ref, v_ref = ref_forward(
        hidden_states, cos, sin, wqkv, wo, num_heads, num_kv_heads, head_size)
    assert jnp.allclose(out, out_ref, atol=5e-2, rtol=5e-2), "attention output mismatch"
    assert jnp.allclose(cache_k[slots], k_rot_ref, atol=5e-2, rtol=5e-2), "cache K mismatch"
    assert jnp.allclose(cache_v[slots], v_ref, atol=5e-2, rtol=5e-2), "cache V mismatch"

    # Sliding-window prefill (Mistral max_past path).
    window = 64
    out_w, _, _ = mistral_attention_forward(
        hidden_states, cos, sin, wqkv_t, wo_t, kv_cache_k, kv_cache_v, slots,
        num_heads, num_kv_heads, head_size, window_size_left=window, tq=tq, tk=tk,
    )
    jax.block_until_ready(out_w)
    out_w_ref, _, _ = ref_forward(
        hidden_states, cos, sin, wqkv, wo, num_heads, num_kv_heads, head_size,
        window_left=window)
    assert jnp.allclose(out_w, out_w_ref, atol=5e-2, rtol=5e-2), "windowed output mismatch"

    print("KERNEL_OK")
</pallas_src>

<mosaic_0001>
module attributes {stable_mosaic.version = 11 : i64} {
  func.func @_matmul_kernel(%arg0: i32, %arg1: i32, %arg2: i32, %arg3: memref<256x512xf32, #tpu.memory_space<vmem>>, %arg4: memref<512x256xf32, #tpu.memory_space<vmem>>, %arg5: memref<256x256xf32, #tpu.memory_space<vmem>>, %arg6: memref<256x256xf32, #tpu.memory_space<vmem>>) attributes {dimension_semantics = [#tpu.dimension_semantics<parallel>, #tpu.dimension_semantics<parallel>, #tpu.dimension_semantics<arbitrary>], iteration_bounds = array<i64: 2, 4, 1>, scalar_prefetch = 0 : i64, scratch_operands = 1 : i64, tpu.core_type = #tpu.core_type<tc>, window_params = [{transform_indices = @transform_0, window_bounds = array<i64: 256, 512>}, {transform_indices = @transform_1, window_bounds = array<i64: 512, 256>}, {transform_indices = @transform_2, window_bounds = array<i64: 256, 256>}]} {
    %c0_i32 = arith.constant 0 : i32
    %0 = arith.cmpi eq, %arg2, %c0_i32 : i32
    %1 = arith.extui %0 : i1 to i32
    %c0_i32_0 = arith.constant 0 : i32
    %2 = arith.cmpi ne, %1, %c0_i32_0 : i32
    scf.if %2 {
      %cst_10 = arith.constant 0.000000e+00 : f32
      %12 = vector.broadcast %cst_10 : f32 to vector<256x256xf32>
      %c0_11 = arith.constant 0 : index
      %c0_12 = arith.constant 0 : index
      %13 = vector.load %arg6[%c0_11, %c0_12] : memref<256x256xf32, #tpu.memory_space<vmem>>, vector<256x256xf32>
      tpu.vector_store %arg6[%c0_11, %c0_12], %12 {strides = array<i32>} : memref<256x256xf32, #tpu.memory_space<vmem>>, vector<256x256xf32>,
    } else {
    }
    %c0 = arith.constant 0 : index
    %c0_1 = arith.constant 0 : index
    %3 = vector.load %arg6[%c0, %c0_1] : memref<256x256xf32, #tpu.memory_space<vmem>>, vector<256x256xf32>
    %c0_2 = arith.constant 0 : index
    %c0_3 = arith.constant 0 : index
    %4 = vector.load %arg3[%c0_2, %c0_3] : memref<256x512xf32, #tpu.memory_space<vmem>>, vector<256x512xf32>
    %c0_4 = arith.constant 0 : index
    %c0_5 = arith.constant 0 : index
    %5 = vector.load %arg4[%c0_4, %c0_5] : memref<512x256xf32, #tpu.memory_space<vmem>>, vector<512x256xf32>
    %cst = arith.constant dense<0.000000e+00> : vector<256x256xf32>
    %6 = tpu.matmul %4, %5, %cst {dimension_numbers = #tpu.dot_dimension_numbers<[1], [0], [0], [1], [0, 0, 1, 1], [], []>} : vector<256x512xf32>, vector<512x256xf32>, vector<256x256xf32> -> vector<256x256xf32>
    %7 = arith.addf %3, %6 : vector<256x256xf32>
    %c0_6 = arith.constant 0 : index
    %c0_7 = arith.constant 0 : index
    %8 = vector.load %arg6[%c0_6, %c0_7] : memref<256x256xf32, #tpu.memory_space<vmem>>, vector<256x256xf32>
    tpu.vector_store %arg6[%c0_6, %c0_7], %7 {strides = array<i32>} : memref<256x256xf32, #tpu.memory_space<vmem>>, vector<256x256xf32>,
    %c0_i32_8 = arith.constant 0 : i32
    %9 = arith.cmpi eq, %arg2, %c0_i32_8 : i32
    %10 = arith.extui %9 : i1 to i32
    %c0_i32_9 = arith.constant 0 : i32
    %11 = arith.cmpi ne, %10, %c0_i32_9 : i32
    scf.if %11 {
      %c0_10 = arith.constant 0 : index
      %c0_11 = arith.constant 0 : index
      %12 = vector.load %arg6[%c0_10, %c0_11] : memref<256x256xf32, #tpu.memory_space<vmem>>, vector<256x256xf32>
      %c0_12 = arith.constant 0 : index
      %c0_13 = arith.constant 0 : index
      %13 = vector.load %arg5[%c0_12, %c0_13] : memref<256x256xf32, #tpu.memory_space<vmem>>, vector<256x256xf32>
      tpu.vector_store %arg5[%c0_12, %c0_13], %12 {strides = array<i32>} : memref<256x256xf32, #tpu.memory_space<vmem>>, vector<256x256xf32>,
    } else {
    }
    return
  }
  func.func @transform_0(%arg0: i32, %arg1: i32, %arg2: i32) -> (i32, i32) {
    %c0_i32 = arith.constant 0 : i32
    return %arg0, %arg2 : i32, i32
  }
  func.func @transform_1(%arg0: i32, %arg1: i32, %arg2: i32) -> (i32, i32) {
    %c0_i32 = arith.constant 0 : i32
    return %arg2, %arg1 : i32, i32
  }
  func.func @transform_2(%arg0: i32, %arg1: i32, %arg2: i32) -> (i32, i32) {
    %c0_i32 = arith.constant 0 : i32
    return %arg0, %arg1 : i32, i32
  }
}

</mosaic_0001>

<bundles_post_ra>
// kernel: tpu_custom_call.1
= control target key start
LH: loop header
LB: loop body
LE: loop exit
PB: predicated region body
PF: predicated region fallthrough
CT: control target
= control target key end

     0   :  { %s2547_s0 = inlined_call_operand.hbm [shape: f32[512,512], index: 0, kind: input, shape index: {}]   ;;  %s2548_s1 = inlined_call_operand.hbm [shape: f32[512,1024], index: 1, kind: input, shape index: {}]   ;;  %s2549_s2 = inlined_call_operand.hbm [shape: f32[512,1024], index: 2, kind: output, shape index: {}]  }
   0x1   :  { %2557 = sst [smem:[#allocation18_spill]] %s2547_s0 }
   0x2   :  { %2558 = sst [smem:[#allocation19_spill]] %s2549_s2 }
   0x3   :  { %7 = vsyncpa [#allocation4], 0 }
   0x4   :  { %9 = vsyncpa [#allocation4 + $0x1], 0 }
   0x5   :  { %10 = vsyncpa [#allocation7], 0 }
   0x6   :  { %12 = vsyncpa [#allocation7 + $0x1], 0 }
   0x7   :  { %13 = vsyncpa [#allocation5], 0 }
   0x8   :  { %15 = vsyncpa [#allocation5 + $0x1], 0  ;;  %s1933_s9 = smov 0   ;;  %s1935_s10 = smov 0  }
   0x9   :  { %s1937_s11 = smov 0   ;;  %s1939_s12 = smov 0  }
   0xa   :  { %s1941_s13 = smov 0   ;;  %s1943_s14 = smov 0  }
   0xb   :  { %s1945_s15 = smov 0   ;;  %s1947_s16 = smov 0  }
   0xc   :  { %s1949_s17 = smov 0   ;;  %s1951_s18 = smov 0  }
   0xd   :  { %s1953_s19 = smov 0   ;;  %s1955_s20 = smov 0  }
   0xe   :  { %s1957_s21 = smov 0   ;;  %s1959_s22 = smov 0  }
   0xf LB: > { %2559 = sst [smem:[#allocation12_spill]] %s1893_s19  ;;  %s1536_s23 = sadd.s32 4294967295, %s1905_s22   ;;  %s1905_s22 = sphi %s1959_s22, %s21_s22   ;;  %s1901_s21 = sphi %s1957_s21, %s2587_s21   ;;  %s1897_s20 = sphi %s1955_s20, %s2598_s20   ;;  %s1893_s19 = sphi %s1953_s19, %s2585_s19   ;;  %s1889_s18 = sphi %s1951_s18, %s2597_s18   ;;  %s1885_s17 = sphi %s1949_s17, %s2596_s17   ;;  %s1881_s16 = sphi %s1947_s16, %s2595_s16   ;;  %s1877_s15 = sphi %s1945_s15, %s2594_s15   ;;  %s1873_s14 = sphi %s1943_s14, %s2593_s14   ;;  %s1869_s13 = sphi %s1941_s13, %s2592_s13   ;;  %s1865_s12 = sphi %s1939_s12, %s2591_s12   ;;  %s1861_s11 = sphi %s1937_s11, %s2590_s11   ;;  %s1857_s10 = sphi %s1935_s10, %s2589_s10   ;;  %s1853_s9 = sphi %s1933_s9, %s2588_s9  }
  0x10   : > { %2560 = sst [smem:[#allocation13_spill]] %s1901_s21  ;;  %p56_p0 = scmp.ne.s32.totalorder %s1885_s17, %s1881_s16 }
  0x11   : > { %p57_p1 = scmp.eq.s32.totalorder %s1905_s22, 0  ;;  %p62_p2 = scmp.ne.s32.totalorder %s1881_s16, %s1877_s15 }
  0x12   : > { %p2008_p3 = scmp.eq.s32.totalorder %s1536_s23, 0  ;;  %p2012_p4 = scmp.eq.s32.totalorder %s1536_s23, 7 }
  0x13   : > { %p58_p5 = por %p57_p1, %p56_p0  ;;  %p1579_p7 = scmp.lt.s32.totalorder %s1905_s22, 8 }
  0x14   : > { %p2020_p6 = por %p2008_p3, %p62_p2  ;;  %s142_s29 = sand.u32 1, %s1885_s17  }
  0x15   : > { %s1559_s30 = sshll.u32 %s1901_s21, 14  ;;  %s1540_s3 = sshll.u32 %s142_s29, 10 }
  0x16   : > { %s2564_s0 = sld [smem:[#allocation18_spill]]  ;;  %s146_s7 = scalar_lea.vmem [#allocation3], %s1540_s3 }
  0x17   : > { %s156_s8 = sshll.u32 %s146_s7, 4  ;;  %p2032_p8 = pnand %p1579_p7, %p58_p5  ;;  %s157_s8 = int_to_ptr.vmem [resolvable:$true] %s156_s8 }
  0x18   : > { %s143_s23 = scalar_lea.sflag [#allocation4], %s142_s29  ;;  %s1714_s25 = scalar_lea.vmem %s157_s8, 16384 }
  0x19   : > { %p1703_p9 = pneg %p2032_p8  ;;  %p1715_p10 = scmp.ne.s32.totalorder %s157_s8, %s1714_s25 }
  0x1a   : > { %s1907_s24 = smov [#allocation3]  }
  0x1b   : > { %p1717_p11 = pnand %p1715_p10, %p1703_p9  ;;  %s1719_s2 = sshll.u32 %s1907_s24, 4  ;;  %s1720_s2 = int_to_ptr.vmem [resolvable:$false] %s1719_s2 }
  0x1c   : > { %s155_s6 = scalar_lea.hbm %s2564_s0, %s1559_s30  ;;  %s1721_s30 = scalar_lea.vmem %s1720_s2, 32768 }
  0x1d   : > { %p1718_p12 = pneg %p1717_p11  ;;  %p1722_p13 = scmp.lt.s32.totalorder %s157_s8, %s1720_s2 }
  0x1e   : > { %p1723_p0 = scmp.lt.s32.totalorder %s1721_s30, %s1714_s25 }
  0x20   : > { %p1724_p2 = por %p1723_p0, %p1722_p13 }
  0x22   : > { %p1725_p5 = pnand %p1724_p2, %p1718_p12 }
  0x24   : > { %1728 = shalt.err (!%p1725_p5)
}
  0x25   : > { %s1908_s3 = smov 512   ;;  %s1909_s2 = smov 32  }
  0x26   : > { %1571 = dma.hbm_to_vmem [thread:$0]  (!%p2032_p8), %s155_s6, 16384, %s157_s8, %s143_s23, %s1908_s3, %s1908_s3, %s1909_s2  }
  0x27   : > { %p1547_p9 = scmp.ge.s32.totalorder %s1905_s22, 1  ;;  %p188_p10 = scmp.lt.s32.totalorder %s1905_s22, 9 }
  0x28   : > { %s1537_s25 = sadd.s32 4294967294, %s1905_s22   ;;  %s36_s29 = sadd.s32 1, %s1897_s20 }
  0x29   : > { %p2042_p11 = pnand %p1547_p9, %p188_p10  ;;  %s77_s4 = sadd.s32 1, %s1873_s14 }
  0x2a   : > { %p38_p12 = scmp.ge.s32.totalorder %s36_s29, 4  ;;  %p84_p13 = scmp.ne.s32.totalorder %s1873_s14, %s1869_s13 }
  0x2b   : > { %p90_p0 = scmp.ne.s32.totalorder %s1869_s13, %s1865_s12  ;;  %s105_s5 = sadd.s32 1, %s1861_s11 }
  0x2c   : > { %s2600_s29 = smov (%p38_p12, %s36_s29), 0  ;;  %s2568_s6 = sadd.s32 1, %s1901_s21 }
  0x2d   : > { %2567 = sst [smem:[#allocation14_spill]] %s2600_s29  ;;  %s2602_s6 = smov (!%p38_p12, %s2568_s6), %s1901_s21 }
  0x2e   : > { %s73_s7 = ssub.s32 %s1897_s20, %s2600_s29  ;;  %p2063_p8 = por %p84_p13, %p57_p1 }
  0x2f   : > { %p42_p2 = scmp.ge.s32.totalorder %s2602_s6, 2  ;;  %p75_p5 = scmp.eq.s32.totalorder %s73_s7, 0 }
  0x30   : > { %p2069_p9 = por %p90_p0, %p2008_p3  ;;  %p115_p10 = scmp.ne.s32.totalorder %s1861_s11, %s1857_s10 }
  0x31   : > { %s2604_s6 = smov (%p42_p2, %s2602_s6), 0  ;;  %p121_p13 = scmp.ne.s32.totalorder %s1857_s10, %s1853_s9 }
  0x32   : > { %2571 = sst [smem:[#allocation15_spill]] %s2604_s6  ;;  %s44_s23 = ssub.s32 %s1901_s21, %s2604_s6 }
  0x33   : > { %s2078_s15 = scalar_select %p75_p5, %s1873_s14, %s77_s4  }
  0x34   : > { %p2084_p1 = por %p2012_p4, %p115_p10  ;;  %p47_p12 = scmp.eq.s32.totalorder %s44_s23, 0 }
  0x35   : > { %2572 = sst [smem:[#allocation16_spill]] %s2078_s15  ;;  %s102_s26 = sor.u32 %s73_s7, %s44_s23 }
  0x36   : > { %s2573_s30 = scalar_select %p2084_p1, 1, 0 }
  0x37   : > { %p103_p3 = scmp.eq.s32.totalorder %s102_s26, 0  ;;  %s2575_s3 = sadd.s32 1, %s1885_s17 }
  0x38   : > { %2574 = sst [smem:[#allocation17_spill]] %s2573_s30  ;;  %p122_p0 = scmp.eq.s32.totalorder %s1537_s25, 7 }
  0x39   : > { %s2093_s2 = scalar_select %p47_p12, %s1885_s17, %s2575_s3  }
  0x3a   : > { %s2096_s0 = scalar_select %p103_p3, %s1861_s11, %s105_s5  }
  0x3b   : > { %s166_s4 = sand.u32 1, %s1873_s14   ;;  %p2099_p2 = por %p122_p0, %p121_p13 }
  0x3c   : > { %s1544_s29 = sshll.u32 %s166_s4, 10  ;;  %s1560_s6 = sshll.u32 %s1897_s20, 8 }
  0x3d   : > { %s2576_s27 = scalar_select %p2099_p2, 1, 0 }
  0x3e   : > { %s170_s21 = scalar_lea.vmem [#allocation6], %s1544_s29  ;;  %s179_s7 = scalar_lea.hbm %s2548_s1, %s1560_s6 }
  0x3f   : > { %s180_s15 = sshll.u32 %s170_s21, 4  ;;  %p2111_p4 = pnand %p1579_p7, %p2063_p8  ;;  %s181_s15 = int_to_ptr.vmem [resolvable:$true] %s180_s15 }
  0x40   : > { %s167_s25 = scalar_lea.sflag [#allocation7], %s166_s4  ;;  %s1742_s23 = scalar_lea.vmem %s181_s15, 16384 }
  0x41   : > { %p1731_p5 = pneg %p2111_p4  ;;  %p1743_p10 = scmp.ne.s32.totalorder %s181_s15, %s1742_s23 }
  0x42   : > { %s1910_s21 = smov [#allocation6]  }
  0x43   : > { %p1745_p12 = pnand %p1743_p10, %p1731_p5  ;;  %s1747_s29 = sshll.u32 %s1910_s21, 4  ;;  %s1748_s29 = int_to_ptr.vmem [resolvable:$false] %s1747_s29 }
  0x44   : > { %s1749_s19 = scalar_lea.vmem %s1748_s29, 32768  ;;  %p1750_p13 = scmp.lt.s32.totalorder %s181_s15, %s1748_s29 }
  0x45   : > { %p1746_p3 = pneg %p1745_p12  ;;  %p1751_p0 = scmp.lt.s32.totalorder %s1749_s19, %s1742_s23 }
  0x47   : > { %p1752_p2 = por %p1751_p0, %p1750_p13 }
  0x49   : > { %p1753_p1 = pnand %p1752_p2, %p1746_p3 }
  0x4b   : > { %1756 = shalt.err (!%p1753_p1)
}
  0x4c   : > { %s1911_s6 = smov 1024   ;;  %s1912_s8 = smov 256  }
  0x4d   : > { %s1913_s30 = smov 16   ;;  %192 = sbr.rel (%p2042_p11) target bundleno = 490 (0x1ea), region = 28 }
  0x4e   : > { %1574 = dma.hbm_to_vmem [thread:$0]  (!%p2111_p4), %s179_s7, 16384, %s181_s15, %s167_s25, %s1911_s6, %s1912_s8, %s1913_s30  }
  0x4f   : > { %s194_s26 = sand.u32 (!%p2042_p11), 1, %s1881_s16  }
  0x50   : > { %s1548_s3 = sshll.u32 (!%p2042_p11), %s194_s26, 10  ;;  %s195_s4 = scalar_lea.sflag (!%p2042_p11), [#allocation4], %s194_s26 }
  0x51   : > { %s2122_s21 = scalar_lea.vmem (!%p2042_p11), [#allocation3], %s1548_s3 }
  0x52   : > { %1840 = dma.done.wait (%p2020_p6), %s195_s4, 16384  }
  0x53   : > { %1842 = vsyncadd (%p2020_p6), %s195_s4, 4294950912  ;;  %s203_s23 = sand.u32 1, %s1869_s13  }
  0x54   : > { %s1549_s5 = sshll.u32 %s203_s23, 10  ;;  %s204_s15 = scalar_lea.sflag [#allocation7], %s203_s23 }
  0x55   : > { %s2129_s7 = scalar_lea.vmem [#allocation6], %s1549_s5 }
  0x56   : > { %1844 = dma.done.wait (%p2069_p9), %s204_s15, 16384  }
  0x57   : > { %1846 = vsyncadd (%p2069_p9), %s204_s15, 4294950912  ;;  %v530_v0 = vld [vmem:[%s2129_s7 + $0xf8] sm:$0xff]  ;;  %v529_v2 = vld [vmem:[%s2129_s7 + $0xf0] sm:$0xff]  ;;  %s230_s28 = sand.u32 1, %s1857_s10   ;;  %s2578_s25 = sld [smem:[#allocation12_spill]] }
  0x58   : > { %v594_v1 = vld [vmem:[%s2129_s7 + $0x2f8] sm:$0xff]  ;;  %627 = vmatprep.subr.mxu0 %v530_v0  ;;  %v593_v3 = vld [vmem:[%s2129_s7 + $0x2f0] sm:$0xff]  ;;  %v528_v4 = vld [vmem:[%s2129_s7 + $0xe8] sm:$0xff]  ;;  %s1550_s24 = sshll.u32 %s230_s28, 9  ;;  %s1553_s29 = sshll.u32 %s1889_s18, 1 }
  0x59   : > { %884 = vmatprep.subr.mxu1 %v594_v1  ;;  %v592_v5 = vld [vmem:[%s2129_s7 + $0x2e8] sm:$0xff]  ;;  %628 = vmatpush1.msra.mxu0 %v529_v2  ;;  %v527_v6 = vld [vmem:[%s2129_s7 + $0xe0] sm:$0xff]  ;;  %v526_v8 = vld [vmem:[%s2129_s7 + $0xd8] sm:$0xff]  ;;  %s2394_s12 = scalar_lea.vmem [#allocation8], %s1550_s24  ;;  %s2579_s8 = sld [smem:[#allocation17_spill]] }
  0x5a   : > { %885 = vmatpush1.msra.mxu1 %v593_v3  ;;  %v591_v7 = vld [vmem:[%s2129_s7 + $0x2e0] sm:$0xff]  ;;  %629 = vmatprep.subr.mxu0 %v528_v4  ;;  %v590_v9 = vld [vmem:[%s2129_s7 + $0x2d8] sm:$0xff]  ;;  %v525_v10 = vld [vmem:[%s2129_s7 + $0xd0] sm:$0xff]  ;;  %s1417_s30 = sshll.u32 %s2394_s12, 4  ;;  %s2580_s4 = sld [smem:[#allocation19_spill]]  ;;  %s2466_s30 = int_to_ptr.vmem [resolvable:$true] %s1417_s30 }
  0x5b   : > { %886 = vmatprep.subr.mxu1 %v592_v5  ;;  %v589_v11 = vld [vmem:[%s2129_s7 + $0x2d0] sm:$0xff]  ;;  %630 = vmatpush1.msra.mxu0 %v527_v6  ;;  %v524_v12 = vld [vmem:[%s2129_s7 + $0xc8] sm:$0xff]  ;;  %v523_v14 = vld [vmem:[%s2129_s7 + $0xc0] sm:$0xff]  ;;  %s2472_s23 = scalar_lea.sflag [#allocation5], %s230_s28  ;;  %s1757_s5 = scalar_lea.vmem %s2466_s30, 8192 }
  0x5c   : > { %887 = vmatpush1.msra.mxu1 %v591_v7  ;;  %v588_v13 = vld [vmem:[%s2129_s7 + $0x2c8] sm:$0xff]  ;;  %631 = vmatprep.subr.mxu0 %v526_v8  ;;  %v587_v15 = vld [vmem:[%s2129_s7 + $0x2c0] sm:$0xff]  ;;  %v522_v16 = vld [vmem:[%s2129_s7 + $0xb8] sm:$0xff]  ;;  %p1758_p6 = scmp.ne.s32.totalorder %s2466_s30, %s1757_s5  ;;  %s1914_s15 = smov [#allocation8]  }
  0x5d   : > { %888 = vmatprep.subr.mxu1 %v590_v9  ;;  %632 = vmatpush1.msra.mxu0 %v525_v10  ;;  %v586_v17 = vld [vmem:[%s2129_s7 + $0x2b8] sm:$0xff]  ;;  %v521_v18 = vld [vmem:[%s2129_s7 + $0xb0] sm:$0xff]  ;;  %v520_v20 = vld [vmem:[%s2129_s7 + $0xa8] sm:$0xff]  ;;  %s1561_s19 = sshll.u32 %s2578_s25, 8 }
  0x5e   : > { %889 = vmatpush1.msra.mxu1 %v589_v11  ;;  %633 = vmatprep.subr.mxu0 %v524_v12  ;;  %v585_v19 = vld [vmem:[%s2129_s7 + $0x2b0] sm:$0xff]  ;;  %v584_v21 = vld [vmem:[%s2129_s7 + $0x2a8] sm:$0xff]  ;;  %v519_v22 = vld [vmem:[%s2129_s7 + $0xa0] sm:$0xff]  ;;  %s1414_s6 = sadd.s32 %s1561_s19, %s1553_s29 }
  0x5f   : > { %890 = vmatprep.subr.mxu1 %v588_v13  ;;  %634 = vmatpush1.msra.mxu0 %v523_v14  ;;  %v583_v23 = vld [vmem:[%s2129_s7 + $0x2a0] sm:$0xff]  ;;  %v518_v24 = vld [vmem:[%s2129_s7 + $0x98] sm:$0xff]  ;;  %v517_v26 = vld [vmem:[%s2129_s7 + $0x90] sm:$0xff]  ;;  %s1555_s18 = sshll.u32 %s1414_s6, 7  ;;  %p2581_p7 = scmp.ne.s32.totalorder %s2579_s8, 0 }
  0x60   : > { %891 = vmatpush1.msra.mxu1 %v587_v15  ;;  %635 = vmatprep.subr.mxu0 %v522_v16  ;;  %v582_v25 = vld [vmem:[%s2129_s7 + $0x298] sm:$0xff]  ;;  %v581_v27 = vld [vmem:[%s2129_s7 + $0x290] sm:$0xff]  ;;  %v516_v28 = vld [vmem:[%s2129_s7 + $0x88] sm:$0xff] }
  0x61   : > { %892 = vmatprep.subr.mxu1 %v586_v17  ;;  %636 = vmatpush1.msra.mxu0 %v521_v18  ;;  %v580_v29 = vld [vmem:[%s2129_s7 + $0x288] sm:$0xff]  ;;  %v515_v30 = vld [vmem:[%s2129_s7 + $0x80] sm:$0xff]  ;;  %v514_v32 = vld [vmem:[%s2129_s7 + $0x78] sm:$0xff]  ;;  %p1759_p11 = pnand %p1758_p6, %p2581_p7 }
  0x62   : > { %893 = vmatpush1.msra.mxu1 %v585_v19  ;;  %637 = vmatprep.subr.mxu0 %v520_v20  ;;  %v579_v31 = vld [vmem:[%s2129_s7 + $0x280] sm:$0xff]  ;;  %v578_v33 = vld [vmem:[%s2129_s7 + $0x278] sm:$0xff]  ;;  %v513_v34 = vld [vmem:[%s2129_s7 + $0x70] sm:$0xff] }
  0x63   : > { %894 = vmatprep.subr.mxu1 %v584_v21  ;;  %638 = vmatpush1.msra.mxu0 %v519_v22  ;;  %v577_v35 = vld [vmem:[%s2129_s7 + $0x270] sm:$0xff]  ;;  %v512_v36 = vld [vmem:[%s2129_s7 + $0x68] sm:$0xff]  ;;  %v511_v38 = vld [vmem:[%s2129_s7 + $0x60] sm:$0xff]  ;;  %p1760_p8 = pneg %p1759_p11 }
  0x64   : > { %895 = vmatpush1.msra.mxu1 %v583_v23  ;;  %639 = vmatprep.subr.mxu0 %v518_v24  ;;  %v576_v37 = vld [vmem:[%s2129_s7 + $0x268] sm:$0xff]  ;;  %v575_v39 = vld [vmem:[%s2129_s7 + $0x260] sm:$0xff]  ;;  %v510_v40 = vld [vmem:[%s2129_s7 + $0x58] sm:$0xff] }
  0x65   : > { %896 = vmatprep.subr.mxu1 %v582_v25  ;;  %640 = vmatpush1.msra.mxu0 %v517_v26  ;;  %v574_v41 = vld [vmem:[%s2129_s7 + $0x258] sm:$0xff]  ;;  %v509_v42 = vld [vmem:[%s2129_s7 + $0x50] sm:$0xff]  ;;  %v508_v44 = vld [vmem:[%s2129_s7 + $0x48] sm:$0xff] }
  0x66   : > { %897 = vmatpush1.msra.mxu1 %v581_v27  ;;  %641 = vmatprep.subr.mxu0 %v516_v28  ;;  %v573_v43 = vld [vmem:[%s2129_s7 + $0x250] sm:$0xff]  ;;  %v572_v45 = vld [vmem:[%s2129_s7 + $0x248] sm:$0xff]  ;;  %v507_v46 = vld [vmem:[%s2129_s7 + $0x40] sm:$0xff] }
  0x67   : > { %898 = vmatprep.subr.mxu1 %v580_v29  ;;  %642 = vmatpush1.msra.mxu0 %v515_v30  ;;  %v571_v47 = vld [vmem:[%s2129_s7 + $0x240] sm:$0xff]  ;;  %v506_v48 = vld [vmem:[%s2129_s7 + $0x38] sm:$0xff]  ;;  %v505_v50 = vld [vmem:[%s2129_s7 + $0x30] sm:$0xff] }
  0x68   : > { %899 = vmatpush1.msra.mxu1 %v579_v31  ;;  %643 = vmatprep.subr.mxu0 %v514_v32  ;;  %v570_v49 = vld [vmem:[%s2129_s7 + $0x238] sm:$0xff]  ;;  %v569_v51 = vld [vmem:[%s2129_s7 + $0x230] sm:$0xff]  ;;  %v504_v52 = vld [vmem:[%s2129_s7 + $0x28] sm:$0xff] }
  0x69   : > { %900 = vmatprep.subr.mxu1 %v578_v33  ;;  %644 = vmatpush1.msra.mxu0 %v513_v34  ;;  %v568_v53 = vld [vmem:[%s2129_s7 + $0x228] sm:$0xff]  ;;  %v503_v54 = vld [vmem:[%s2129_s7 + $0x20] sm:$0xff]  ;;  %v502_v56 = vld [vmem:[%s2129_s7 + $0x18] sm:$0xff] }
  0x6a   : > { %901 = vmatpush1.msra.mxu1 %v577_v35  ;;  %645 = vmatprep.subr.mxu0 %v512_v36  ;;  %v567_v55 = vld [vmem:[%s2129_s7 + $0x220] sm:$0xff]  ;;  %v566_v57 = vld [vmem:[%s2129_s7 + $0x218] sm:$0xff]  ;;  %v501_v58 = vld [vmem:[%s2129_s7 + $0x10] sm:$0xff] }
  0x6b   : > { %902 = vmatprep.subr.mxu1 %v576_v37  ;;  %646 = vmatpush1.msra.mxu0 %v511_v38  ;;  %v565_v59 = vld [vmem:[%s2129_s7 + $0x210] sm:$0xff]  ;;  %v500_v60 = vld [vmem:[%s2129_s7 + $0x8] sm:$0xff]  ;;  %v499_v62 = vld [vmem:[%s2129_s7] sm:$0xff] }
  0x6c   : > { %903 = vmatpush1.msra.mxu1 %v575_v39  ;;  %647 = vmatprep.subr.mxu0 %v510_v40  ;;  %v564_v61 = vld [vmem:[%s2129_s7 + $0x208] sm:$0xff]  ;;  %v563_v63 = vld [vmem:[%s2129_s7 + $0x200] sm:$0xff]  ;;  %v562_v0 = vld [vmem:[%s2129_s7 + $0x1f8] sm:$0xff] }
  0x6d   : > { %904 = vmatprep.subr.mxu1 %v574_v41  ;;  %648 = vmatpush1.msra.mxu0 %v509_v42  ;;  %v626_v1 = vld [vmem:[%s2129_s7 + $0x3f8] sm:$0xff]  ;;  %v561_v2 = vld [vmem:[%s2129_s7 + $0x1f0] sm:$0xff]  ;;  %v560_v4 = vld [vmem:[%s2129_s7 + $0x1e8] sm:$0xff] }
  0x6e   : > { %905 = vmatpush1.msra.mxu1 %v573_v43  ;;  %649 = vmatprep.subr.mxu0 %v508_v44  ;;  %v625_v3 = vld [vmem:[%s2129_s7 + $0x3f0] sm:$0xff]  ;;  %v624_v5 = vld [vmem:[%s2129_s7 + $0x3e8] sm:$0xff]  ;;  %v559_v6 = vld [vmem:[%s2129_s7 + $0x1e0] sm:$0xff] }
  0x6f   : > { %906 = vmatprep.subr.mxu1 %v572_v45  ;;  %650 = vmatpush1.msra.mxu0 %v507_v46  ;;  %v623_v7 = vld [vmem:[%s2129_s7 + $0x3e0] sm:$0xff]  ;;  %v558_v8 = vld [vmem:[%s2129_s7 + $0x1d8] sm:$0xff]  ;;  %v557_v10 = vld [vmem:[%s2129_s7 + $0x1d0] sm:$0xff] }
  0x70   : > { %907 = vmatpush1.msra.mxu1 %v571_v47  ;;  %651 = vmatprep.subr.mxu0 %v506_v48  ;;  %v622_v9 = vld [vmem:[%s2129_s7 + $0x3d8] sm:$0xff]  ;;  %v621_v11 = vld [vmem:[%s2129_s7 + $0x3d0] sm:$0xff]  ;;  %v556_v12 = vld [vmem:[%s2129_s7 + $0x1c8] sm:$0xff] }
  0x71   : > { %908 = vmatprep.subr.mxu1 %v570_v49  ;;  %652 = vmatpush1.msra.mxu0 %v505_v50  ;;  %v620_v13 = vld [vmem:[%s2129_s7 + $0x3c8] sm:$0xff]  ;;  %v555_v14 = vld [vmem:[%s2129_s7 + $0x1c0] sm:$0xff]  ;;  %v554_v16 = vld [vmem:[%s2129_s7 + $0x1b8] sm:$0xff] }
  0x72   : > { %909 = vmatpush1.msra.mxu1 %v569_v51  ;;  %653 = vmatprep.subr.mxu0 %v504_v52  ;;  %v619_v15 = vld [vmem:[%s2129_s7 + $0x3c0] sm:$0xff]  ;;  %v618_v17 = vld [vmem:[%s2129_s7 + $0x3b8] sm:$0xff]  ;;  %v553_v18 = vld [vmem:[%s2129_s7 + $0x1b0] sm:$0xff] }
  0x73   : > { %910 = vmatprep.subr.mxu1 %v568_v53  ;;  %654 = vmatpush1.msra.mxu0 %v503_v54  ;;  %v617_v19 = vld [vmem:[%s2129_s7 + $0x3b0] sm:$0xff]  ;;  %v552_v20 = vld [vmem:[%s2129_s7 + $0x1a8] sm:$0xff]  ;;  %v551_v22 = vld [vmem:[%s2129_s7 + $0x1a0] sm:$0xff] }
  0x74   : > { %911 = vmatpush1.msra.mxu1 %v567_v55  ;;  %655 = vmatprep.subr.mxu0 %v502_v56  ;;  %v616_v21 = vld [vmem:[%s2129_s7 + $0x3a8] sm:$0xff]  ;;  %v615_v23 = vld [vmem:[%s2129_s7 + $0x3a0] sm:$0xff]  ;;  %v550_v24 = vld [vmem:[%s2129_s7 + $0x198] sm:$0xff] }
  0x75   : > { %912 = vmatprep.subr.mxu1 %v566_v57  ;;  %656 = vmatpush1.msra.mxu0 %v501_v58  ;;  %v614_v25 = vld [vmem:[%s2129_s7 + $0x398] sm:$0xff]  ;;  %v549_v26 = vld [vmem:[%s2129_s7 + $0x190] sm:$0xff]  ;;  %v548_v28 = vld [vmem:[%s2129_s7 + $0x188] sm:$0xff] }
  0x76   : > { %913 = vmatpush1.msra.mxu1 %v565_v59  ;;  %657 = vmatprep.subr.mxu0 %v500_v60  ;;  %v613_v27 = vld [vmem:[%s2129_s7 + $0x390] sm:$0xff]  ;;  %v612_v29 = vld [vmem:[%s2129_s7 + $0x388] sm:$0xff]  ;;  %v547_v30 = vld [vmem:[%s2129_s7 + $0x180] sm:$0xff] }
  0x77   : > { %914 = vmatprep.subr.mxu1 %v564_v61  ;;  %658 = vmatpush1.msra.mxu0 %v499_v62  ;;  %v611_v31 = vld [vmem:[%s2129_s7 + $0x380] sm:$0xff]  ;;  %v546_v32 = vld [vmem:[%s2129_s7 + $0x178] sm:$0xff]  ;;  %v545_v34 = vld [vmem:[%s2129_s7 + $0x170] sm:$0xff] }
  0x78   : > { %915 = vmatpush1.msra.mxu1 %v563_v63  ;;  %659 = vmatprep.subr.mxu0 %v562_v0  ;;  %v610_v33 = vld [vmem:[%s2129_s7 + $0x378] sm:$0xff]  ;;  %v609_v35 = vld [vmem:[%s2129_s7 + $0x370] sm:$0xff]  ;;  %v544_v36 = vld [vmem:[%s2129_s7 + $0x168] sm:$0xff] }
  0x79   : > { %916 = vmatprep.subr.mxu1 %v626_v1  ;;  %660 = vmatpush2.msra.mxu0 %v561_v2  ;;  %v608_v37 = vld [vmem:[%s2129_s7 + $0x368] sm:$0xff]  ;;  %v543_v38 = vld [vmem:[%s2129_s7 + $0x160] sm:$0xff]  ;;  %v542_v40 = vld [vmem:[%s2129_s7 + $0x158] sm:$0xff] }
  0x7a   : > { %917 = vmatpush2.msra.mxu1 %v625_v3  ;;  %661 = vmatprep.subr.mxu0 %v560_v4  ;;  %v607_v39 = vld [vmem:[%s2129_s7 + $0x360] sm:$0xff]  ;;  %v606_v41 = vld [vmem:[%s2129_s7 + $0x358] sm:$0xff]  ;;  %v541_v42 = vld [vmem:[%s2129_s7 + $0x150] sm:$0xff] }
  0x7b   : > { %918 = vmatprep.subr.mxu1 %v624_v5  ;;  %662 = vmatpush2.msra.mxu0 %v559_v6  ;;  %v605_v43 = vld [vmem:[%s2129_s7 + $0x350] sm:$0xff]  ;;  %v540_v44 = vld [vmem:[%s2129_s7 + $0x148] sm:$0xff]  ;;  %v539_v46 = vld [vmem:[%s2129_s7 + $0x140] sm:$0xff] }
  0x7c   : > { %919 = vmatpush2.msra.mxu1 %v623_v7  ;;  %663 = vmatprep.subr.mxu0 %v558_v8  ;;  %v604_v45 = vld [vmem:[%s2129_s7 + $0x348] sm:$0xff]  ;;  %v603_v47 = vld [vmem:[%s2129_s7 + $0x340] sm:$0xff]  ;;  %v538_v48 = vld [vmem:[%s2129_s7 + $0x138] sm:$0xff] }
  0x7d   : > { %920 = vmatprep.subr.mxu1 %v622_v9  ;;  %664 = vmatpush2.msra.mxu0 %v557_v10  ;;  %v602_v49 = vld [vmem:[%s2129_s7 + $0x338] sm:$0xff]  ;;  %v537_v50 = vld [vmem:[%s2129_s7 + $0x130] sm:$0xff]  ;;  %v536_v52 = vld [vmem:[%s2129_s7 + $0x128] sm:$0xff] }
  0x7e   : > { %921 = vmatpush2.msra.mxu1 %v621_v11  ;;  %665 = vmatprep.subr.mxu0 %v556_v12  ;;  %v601_v51 = vld [vmem:[%s2129_s7 + $0x330] sm:$0xff]  ;;  %v600_v53 = vld [vmem:[%s2129_s7 + $0x328] sm:$0xff]  ;;  %v535_v54 = vld [vmem:[%s2129_s7 + $0x120] sm:$0xff] }
  0x7f   : > { %922 = vmatprep.subr.mxu1 %v620_v13  ;;  %666 = vmatpush2.msra.mxu0 %v555_v14  ;;  %v599_v55 = vld [vmem:[%s2129_s7 + $0x320] sm:$0xff]  ;;  %v534_v56 = vld [vmem:[%s2129_s7 + $0x118] sm:$0xff]  ;;  %v533_v58 = vld [vmem:[%s2129_s7 + $0x110] sm:$0xff] }
  0x80   : > { %923 = vmatpush2.msra.mxu1 %v619_v15  ;;  %667 = vmatprep.subr.mxu0 %v554_v16  ;;  %v598_v57 = vld [vmem:[%s2129_s7 + $0x318] sm:$0xff]  ;;  %v597_v59 = vld [vmem:[%s2129_s7 + $0x310] sm:$0xff]  ;;  %v532_v60 = vld [vmem:[%s2129_s7 + $0x108] sm:$0xff] }
  0x81   : > { %924 = vmatprep.subr.mxu1 %v618_v17  ;;  %668 = vmatpush2.msra.mxu0 %v553_v18  ;;  %v596_v61 = vld [vmem:[%s2129_s7 + $0x308] sm:$0xff]  ;;  %v531_v62 = vld [vmem:[%s2129_s7 + $0x100] sm:$0xff]  ;;  %v374_v1 = vld [vmem:[%s2122_s21 + $0x18] sm:$0xff] }
  0x82   : > { %925 = vmatpush2.msra.mxu1 %v617_v19  ;;  %669 = vmatprep.subr.mxu0 %v552_v20  ;;  %v372_v63 = vld [vmem:[%s2122_s21 + $0x8] sm:$0xff]  ;;  %v595_v0 = vld [vmem:[%s2129_s7 + $0x300] sm:$0xff]  ;;  %v373_v3 = vld [vmem:[%s2122_s21 + $0x10] sm:$0xff]  ;;  %s1761_s7 = sshll.u32 %s1914_s15, 4  ;;  %s1762_s7 = int_to_ptr.vmem [resolvable:$false] %s1761_s7 }
  0x83   : > { %926 = vmatprep.subr.mxu1 %v616_v21  ;;  %670 = vmatpush2.msra.mxu0 %v551_v22  ;;  %v371_v2 = vld [vmem:[%s2122_s21] sm:$0xff]  ;;  %v376_v4 = vld [vmem:[%s2122_s21 + $0x28] sm:$0xff]  ;;  %v378_v5 = vld [vmem:[%s2122_s21 + $0x38] sm:$0xff]  ;;  %s1763_s24 = scalar_lea.vmem %s1762_s7, 16384  ;;  %p1764_p9 = scmp.lt.s32.totalorder %s2466_s30, %s1762_s7 }
  0x84   : > { %927 = vmatpush2.msra.mxu1 %v615_v23  ;;  %671 = vmatprep.subr.mxu0 %v550_v24  ;;  %v375_v6 = vld [vmem:[%s2122_s21 + $0x20] sm:$0xff]  ;;  %v377_v7 = vld [vmem:[%s2122_s21 + $0x30] sm:$0xff]  ;;  %v380_v8 = vld [vmem:[%s2122_s21 + $0x48] sm:$0xff]  ;;  %p1765_p1 = scmp.lt.s32.totalorder %s1763_s24, %s1757_s5 }
  0x85   : > { %928 = vmatprep.subr.mxu1 %v614_v25  ;;  %672 = vmatpush2.msra.mxu0 %v549_v26  ;;  %v382_v9 = vld [vmem:[%s2122_s21 + $0x58] sm:$0xff]  ;;  %v379_v10 = vld [vmem:[%s2122_s21 + $0x40] sm:$0xff]  ;;  %v381_v11 = vld [vmem:[%s2122_s21 + $0x50] sm:$0xff] }
  0x86   : > { %929 = vmatpush2.msra.mxu1 %v613_v27  ;;  %673 = vmatprep.subr.mxu0 %v548_v28  ;;  %v384_v12 = vld [vmem:[%s2122_s21 + $0x68] sm:$0xff]  ;;  %v386_v13 = vld [vmem:[%s2122_s21 + $0x78] sm:$0xff]  ;;  %v383_v14 = vld [vmem:[%s2122_s21 + $0x60] sm:$0xff]  ;;  %p1766_p2 = por %p1765_p1, %p1764_p9 }
  0x87   : > { %930 = vmatprep.subr.mxu1 %v612_v29  ;;  %674 = vmatpush2.msra.mxu0 %v547_v30  ;;  %v385_v15 = vld [vmem:[%s2122_s21 + $0x70] sm:$0xff]  ;;  %v388_v16 = vld [vmem:[%s2122_s21 + $0x88] sm:$0xff]  ;;  %v390_v17 = vld [vmem:[%s2122_s21 + $0x98] sm:$0xff] }
  0x88   : > { %931 = vmatpush2.msra.mxu1 %v611_v31  ;;  %675 = vmatprep.subr.mxu0 %v546_v32  ;;  %v387_v18 = vld [vmem:[%s2122_s21 + $0x80] sm:$0xff]  ;;  %v389_v19 = vld [vmem:[%s2122_s21 + $0x90] sm:$0xff]  ;;  %v392_v20 = vld [vmem:[%s2122_s21 + $0xa8] sm:$0xff]  ;;  %p1767_p4 = pnand %p1766_p2, %p1760_p8 }
  0x89   : > { %932 = vmatprep.subr.mxu1 %v610_v33  ;;  %676 = vmatpush2.msra.mxu0 %v545_v34  ;;  %v394_v21 = vld [vmem:[%s2122_s21 + $0xb8] sm:$0xff]  ;;  %v391_v22 = vld [vmem:[%s2122_s21 + $0xa0] sm:$0xff]  ;;  %v393_v23 = vld [vmem:[%s2122_s21 + $0xb0] sm:$0xff] }
  0x8a   : > { %933 = vmatpush2.msra.mxu1 %v609_v35  ;;  %677 = vmatprep.subr.mxu0 %v544_v36  ;;  %v396_v24 = vld [vmem:[%s2122_s21 + $0xc8] sm:$0xff]  ;;  %v398_v25 = vld [vmem:[%s2122_s21 + $0xd8] sm:$0xff]  ;;  %v395_v26 = vld [vmem:[%s2122_s21 + $0xc0] sm:$0xff] }
  0x8b   : > { %934 = vmatprep.subr.mxu1 %v608_v37  ;;  %678 = vmatpush2.msra.mxu0 %v543_v38  ;;  %v397_v27 = vld [vmem:[%s2122_s21 + $0xd0] sm:$0xff]  ;;  %v400_v28 = vld [vmem:[%s2122_s21 + $0xe8] sm:$0xff]  ;;  %v402_v29 = vld [vmem:[%s2122_s21 + $0xf8] sm:$0xff] }
  0x8c   : > { %935 = vmatpush2.msra.mxu1 %v607_v39  ;;  %679 = vmatprep.subr.mxu0 %v542_v40  ;;  %v399_v30 = vld [vmem:[%s2122_s21 + $0xe0] sm:$0xff]  ;;  %v401_v31 = vld [vmem:[%s2122_s21 + $0xf0] sm:$0xff]  ;;  %v404_v32 = vld [vmem:[%s2122_s21 + $0x108] sm:$0xff] }
  0x8d   : > { %936 = vmatprep.subr.mxu1 %v606_v41  ;;  %680 = vmatpush2.msra.mxu0 %v541_v42  ;;  %v406_v33 = vld [vmem:[%s2122_s21 + $0x118] sm:$0xff]  ;;  %v403_v34 = vld [vmem:[%s2122_s21 + $0x100] sm:$0xff]  ;;  %v405_v35 = vld [vmem:[%s2122_s21 + $0x110] sm:$0xff] }
  0x8e   : > { %937 = vmatpush2.msra.mxu1 %v605_v43  ;;  %681 = vmatprep.subr.mxu0 %v540_v44  ;;  %v408_v36 = vld [vmem:[%s2122_s21 + $0x128] sm:$0xff]  ;;  %v410_v37 = vld [vmem:[%s2122_s21 + $0x138] sm:$0xff]  ;;  %v407_v38 = vld [vmem:[%s2122_s21 + $0x120] sm:$0xff] }
  0x8f   : > { %938 = vmatprep.subr.mxu1 %v604_v45  ;;  %682 = vmatpush2.msra.mxu0 %v539_v46  ;;  %v409_v39 = vld [vmem:[%s2122_s21 + $0x130] sm:$0xff]  ;;  %v412_v40 = vld [vmem:[%s2122_s21 + $0x148] sm:$0xff]  ;;  %v414_v41 = vld [vmem:[%s2122_s21 + $0x158] sm:$0xff] }
  0x90   : > { %939 = vmatpush2.msra.mxu1 %v603_v47  ;;  %683 = vmatprep.subr.mxu0 %v538_v48  ;;  %v411_v42 = vld [vmem:[%s2122_s21 + $0x140] sm:$0xff]  ;;  %v413_v43 = vld [vmem:[%s2122_s21 + $0x150] sm:$0xff]  ;;  %v416_v44 = vld [vmem:[%s2122_s21 + $0x168] sm:$0xff] }
  0x91   : > { %940 = vmatprep.subr.mxu1 %v602_v49  ;;  %684 = vmatpush2.msra.mxu0 %v537_v50  ;;  %v418_v45 = vld [vmem:[%s2122_s21 + $0x178] sm:$0xff]  ;;  %v415_v46 = vld [vmem:[%s2122_s21 + $0x160] sm:$0xff]  ;;  %v417_v47 = vld [vmem:[%s2122_s21 + $0x170] sm:$0xff] }
  0x92   : > { %941 = vmatpush2.msra.mxu1 %v601_v51  ;;  %685 = vmatprep.subr.mxu0 %v536_v52  ;;  %v420_v48 = vld [vmem:[%s2122_s21 + $0x188] sm:$0xff]  ;;  %v422_v49 = vld [vmem:[%s2122_s21 + $0x198] sm:$0xff]  ;;  %v419_v50 = vld [vmem:[%s2122_s21 + $0x180] sm:$0xff] }
  0x93   : > { %942 = vmatprep.subr.mxu1 %v600_v53  ;;  %686 = vmatpush2.msra.mxu0 %v535_v54  ;;  %v421_v51 = vld [vmem:[%s2122_s21 + $0x190] sm:$0xff]  ;;  %v424_v52 = vld [vmem:[%s2122_s21 + $0x1a8] sm:$0xff]  ;;  %v426_v53 = vld [vmem:[%s2122_s21 + $0x1b8] sm:$0xff] }
  0x94   : > { %943 = vmatpush2.msra.mxu1 %v599_v55  ;;  %687 = vmatprep.subr.mxu0 %v534_v56  ;;  %v423_v54 = vld [vmem:[%s2122_s21 + $0x1a0] sm:$0xff]  ;;  %v425_v55 = vld [vmem:[%s2122_s21 + $0x1b0] sm:$0xff]  ;;  %v428_v56 = vld [vmem:[%s2122_s21 + $0x1c8] sm:$0xff] }
  0x95   : > { %944 = vmatprep.subr.mxu1 %v598_v57  ;;  %688 = vmatpush2.msra.mxu0 %v533_v58  ;;  %v430_v57 = vld [vmem:[%s2122_s21 + $0x1d8] sm:$0xff]  ;;  %v427_v58 = vld [vmem:[%s2122_s21 + $0x1c0] sm:$0xff] }
  0x96   : > { %945 = vmatpush2.msra.mxu1 %v597_v59  ;;  %689 = vmatprep.subr.mxu0 %v532_v60  ;;  %v429_v59 = vld [vmem:[%s2122_s21 + $0x1d0] sm:$0xff]  ;;  %v432_v60 = vld [vmem:[%s2122_s21 + $0x1e8] sm:$0xff] }
  0x97   : > { %946 = vmatprep.subr.mxu1 %v596_v61  ;;  %690 = vmatpush2.msra.mxu0 %v531_v62  ;;  %v434_v61 = vld [vmem:[%s2122_s21 + $0x1f8] sm:$0xff]  ;;  %v431_v62 = vld [vmem:[%s2122_s21 + $0x1e0] sm:$0xff] }
  0x98   : > { %691 = vmatprep.mubr.f32.mxu0 %v372_v63  ;;  %947 = vmatpush2.msra.mxu1 %v595_v0  ;;  %v433_v63 = vld [vmem:[%s2122_s21 + $0x1f0] sm:$0xff]  ;;  %v436_v0 = vld [vmem:[%s2122_s21 + $0x208] sm:$0xff] }
  0x99   : > { %948 = vmatprep.mubr.f32.mxu1 %v374_v1  ;;  %692 = vmatmul.mubr.f32.vlgmr.msra.gmra.mxu0 %v371_v2  ;;  %v438_v1 = vld [vmem:[%s2122_s21 + $0x218] sm:$0xff]  ;;  %v435_v2 = vld [vmem:[%s2122_s21 + $0x200] sm:$0xff] }
  0x9a   : > { %949 = vmatmul.mubr.f32.vlgmr.msra.gmra.mxu1 %v373_v3  ;;  %697 = vmatprep.mubr.f32.mxu0 %v376_v4  ;;  %v437_v3 = vld [vmem:[%s2122_s21 + $0x210] sm:$0xff]  ;;  %v440_v4 = vld [vmem:[%s2122_s21 + $0x228] sm:$0xff] }
  0x9b   : > { %954 = vmatprep.mubr.f32.mxu1 %v378_v5  ;;  %v442_v5 = vld [vmem:[%s2122_s21 + $0x238] sm:$0xff] }
  0x9d   : > { %698 = vmatmul.mubr.f32.gmra.mxu0 %v375_v6  ;;  %v439_v6 = vld [vmem:[%s2122_s21 + $0x220] sm:$0xff] }
  0x9e   : > { %955 = vmatmul.mubr.f32.gmra.mxu1 %v377_v7  ;;  %703 = vmatprep.mubr.f32.mxu0 %v380_v8  ;;  %v441_v7 = vld [vmem:[%s2122_s21 + $0x230] sm:$0xff]  ;;  %v444_v8 = vld [vmem:[%s2122_s21 + $0x248] sm:$0xff] }
  0x9f   : > { %960 = vmatprep.mubr.f32.mxu1 %v382_v9  ;;  %v446_v9 = vld [vmem:[%s2122_s21 + $0x258] sm:$0xff] }
  0xa1   : > { %704 = vmatmul.mubr.f32.gmra.mxu0 %v379_v10  ;;  %v443_v10 = vld [vmem:[%s2122_s21 + $0x240] sm:$0xff] }
  0xa2   : > { %961 = vmatmul.mubr.f32.gmra.mxu1 %v381_v11  ;;  %709 = vmatprep.mubr.f32.mxu0 %v384_v12  ;;  %v445_v11 = vld [vmem:[%s2122_s21 + $0x250] sm:$0xff]  ;;  %v448_v12 = vld [vmem:[%s2122_s21 + $0x268] sm:$0xff] }
  0xa3   : > { %966 = vmatprep.mubr.f32.mxu1 %v386_v13  ;;  %v450_v13 = vld [vmem:[%s2122_s21 + $0x278] sm:$0xff] }
  0xa5   : > { %710 = vmatmul.mubr.f32.gmra.mxu0 %v383_v14  ;;  %v447_v14 = vld [vmem:[%s2122_s21 + $0x260] sm:$0xff] }
  0xa6   : > { %967 = vmatmul.mubr.f32.gmra.mxu1 %v385_v15  ;;  %715 = vmatprep.mubr.f32.mxu0 %v388_v16  ;;  %v449_v15 = vld [vmem:[%s2122_s21 + $0x270] sm:$0xff]  ;;  %v452_v16 = vld [vmem:[%s2122_s21 + $0x288] sm:$0xff] }
  0xa7   : > { %972 = vmatprep.mubr.f32.mxu1 %v390_v17  ;;  %v454_v17 = vld [vmem:[%s2122_s21 + $0x298] sm:$0xff] }
  0xa9   : > { %716 = vmatmul.mubr.f32.gmra.mxu0 %v387_v18  ;;  %v451_v18 = vld [vmem:[%s2122_s21 + $0x280] sm:$0xff] }
  0xaa   : > { %973 = vmatmul.mubr.f32.gmra.mxu1 %v389_v19  ;;  %721 = vmatprep.mubr.f32.mxu0 %v392_v20  ;;  %v453_v19 = vld [vmem:[%s2122_s21 + $0x290] sm:$0xff]  ;;  %v456_v20 = vld [vmem:[%s2122_s21 + $0x2a8] sm:$0xff] }
  0xab   : > { %978 = vmatprep.mubr.f32.mxu1 %v394_v21  ;;  %v458_v21 = vld [vmem:[%s2122_s21 + $0x2b8] sm:$0xff] }
  0xad   : > { %722 = vmatmul.mubr.f32.gmra.mxu0 %v391_v22  ;;  %v455_v22 = vld [vmem:[%s2122_s21 + $0x2a0] sm:$0xff] }
  0xae   : > { %979 = vmatmul.mubr.f32.gmra.mxu1 %v393_v23  ;;  %727 = vmatprep.mubr.f32.mxu0 %v396_v24  ;;  %v457_v23 = vld [vmem:[%s2122_s21 + $0x2b0] sm:$0xff]  ;;  %v460_v24 = vld [vmem:[%s2122_s21 + $0x2c8] sm:$0xff] }
  0xaf   : > { %984 = vmatprep.mubr.f32.mxu1 %v398_v25  ;;  %v462_v25 = vld [vmem:[%s2122_s21 + $0x2d8] sm:$0xff] }
  0xb1   : > { %728 = vmatmul.mubr.f32.gmra.mxu0 %v395_v26  ;;  %v459_v26 = vld [vmem:[%s2122_s21 + $0x2c0] sm:$0xff] }
  0xb2   : > { %985 = vmatmul.mubr.f32.gmra.mxu1 %v397_v27  ;;  %733 = vmatprep.mubr.f32.mxu0 %v400_v28  ;;  %v461_v27 = vld [vmem:[%s2122_s21 + $0x2d0] sm:$0xff]  ;;  %v464_v28 = vld [vmem:[%s2122_s21 + $0x2e8] sm:$0xff] }
  0xb3   : > { %990 = vmatprep.mubr.f32.mxu1 %v402_v29  ;;  %v466_v29 = vld [vmem:[%s2122_s21 + $0x2f8] sm:$0xff] }
  0xb5   : > { %734 = vmatmul.mubr.f32.gmra.mxu0 %v399_v30  ;;  %v463_v30 = vld [vmem:[%s2122_s21 + $0x2e0] sm:$0xff] }
  0xb6   : > { %991 = vmatmul.mubr.f32.gmra.mxu1 %v401_v31  ;;  %739 = vmatprep.mubr.f32.mxu0 %v404_v32  ;;  %v465_v31 = vld [vmem:[%s2122_s21 + $0x2f0] sm:$0xff]  ;;  %v468_v32 = vld [vmem:[%s2122_s21 + $0x308] sm:$0xff] }
  0xb7   : > { %996 = vmatprep.mubr.f32.mxu1 %v406_v33  ;;  %v470_v33 = vld [vmem:[%s2122_s21 + $0x318] sm:$0xff] }
  0xb9   : > { %740 = vmatmul.mubr.f32.gmra.mxu0 %v403_v34  ;;  %v467_v34 = vld [vmem:[%s2122_s21 + $0x300] sm:$0xff] }
  0xba   : > { %997 = vmatmul.mubr.f32.gmra.mxu1 %v405_v35  ;;  %745 = vmatprep.mubr.f32.mxu0 %v408_v36  ;;  %v469_v35 = vld [vmem:[%s2122_s21 + $0x310] sm:$0xff]  ;;  %v472_v36 = vld [vmem:[%s2122_s21 + $0x328] sm:$0xff] }
  0xbb   : > { %1002 = vmatprep.mubr.f32.mxu1 %v410_v37  ;;  %v474_v37 = vld [vmem:[%s2122_s21 + $0x338] sm:$0xff] }
  0xbd   : > { %746 = vmatmul.mubr.f32.gmra.mxu0 %v407_v38  ;;  %v471_v38 = vld [vmem:[%s2122_s21 + $0x320] sm:$0xff] }
  0xbe   : > { %1003 = vmatmul.mubr.f32.gmra.mxu1 %v409_v39  ;;  %751 = vmatprep.mubr.f32.mxu0 %v412_v40  ;;  %v473_v39 = vld [vmem:[%s2122_s21 + $0x330] sm:$0xff]  ;;  %v476_v40 = vld [vmem:[%s2122_s21 + $0x348] sm:$0xff] }
  0xbf   : > { %1008 = vmatprep.mubr.f32.mxu1 %v414_v41  ;;  %v478_v41 = vld [vmem:[%s2122_s21 + $0x358] sm:$0xff] }
  0xc1   : > { %752 = vmatmul.mubr.f32.gmra.mxu0 %v411_v42  ;;  %v475_v42 = vld [vmem:[%s2122_s21 + $0x340] sm:$0xff] }
  0xc2   : > { %1009 = vmatmul.mubr.f32.gmra.mxu1 %v413_v43  ;;  %757 = vmatprep.mubr.f32.mxu0 %v416_v44  ;;  %v477_v43 = vld [vmem:[%s2122_s21 + $0x350] sm:$0xff]  ;;  %v480_v44 = vld [vmem:[%s2122_s21 + $0x368] sm:$0xff] }
  0xc3   : > { %1014 = vmatprep.mubr.f32.mxu1 %v418_v45  ;;  %v482_v45 = vld [vmem:[%s2122_s21 + $0x378] sm:$0xff] }
  0xc5   : > { %758 = vmatmul.mubr.f32.gmra.mxu0 %v415_v46  ;;  %v479_v46 = vld [vmem:[%s2122_s21 + $0x360] sm:$0xff] }
  0xc6   : > { %1015 = vmatmul.mubr.f32.gmra.mxu1 %v417_v47  ;;  %763 = vmatprep.mubr.f32.mxu0 %v420_v48  ;;  %v481_v47 = vld [vmem:[%s2122_s21 + $0x370] sm:$0xff]  ;;  %v484_v48 = vld [vmem:[%s2122_s21 + $0x388] sm:$0xff] }
  0xc7   : > { %1020 = vmatprep.mubr.f32.mxu1 %v422_v49  ;;  %v486_v49 = vld [vmem:[%s2122_s21 + $0x398] sm:$0xff] }
  0xc9   : > { %764 = vmatmul.mubr.f32.gmra.mxu0 %v419_v50  ;;  %v483_v50 = vld [vmem:[%s2122_s21 + $0x380] sm:$0xff] }
  0xca   : > { %1021 = vmatmul.mubr.f32.gmra.mxu1 %v421_v51  ;;  %769 = vmatprep.mubr.f32.mxu0 %v424_v52  ;;  %v485_v51 = vld [vmem:[%s2122_s21 + $0x390] sm:$0xff]  ;;  %v488_v52 = vld [vmem:[%s2122_s21 + $0x3a8] sm:$0xff] }
  0xcb   : > { %1026 = vmatprep.mubr.f32.mxu1 %v426_v53  ;;  %v490_v53 = vld [vmem:[%s2122_s21 + $0x3b8] sm:$0xff] }
  0xcd   : > { %770 = vmatmul.mubr.f32.gmra.mxu0 %v423_v54  ;;  %v487_v54 = vld [vmem:[%s2122_s21 + $0x3a0] sm:$0xff] }
  0xce   : > { %1027 = vmatmul.mubr.f32.gmra.mxu1 %v425_v55  ;;  %775 = vmatprep.mubr.f32.mxu0 %v428_v56  ;;  %v489_v55 = vld [vmem:[%s2122_s21 + $0x3b0] sm:$0xff]  ;;  %v492_v56 = vld [vmem:[%s2122_s21 + $0x3c8] sm:$0xff] }
  0xcf   : > { %1032 = vmatprep.mubr.f32.mxu1 %v430_v57  ;;  %v494_v57 = vld [vmem:[%s2122_s21 + $0x3d8] sm:$0xff] }
  0xd1   : > { %776 = vmatmul.mubr.f32.gmra.mxu0 %v427_v58  ;;  %v491_v58 = vld [vmem:[%s2122_s21 + $0x3c0] sm:$0xff] }
  0xd2   : > { %1033 = vmatmul.mubr.f32.gmra.mxu1 %v429_v59  ;;  %781 = vmatprep.mubr.f32.mxu0 %v432_v60  ;;  %v493_v59 = vld [vmem:[%s2122_s21 + $0x3d0] sm:$0xff]  ;;  %v496_v60 = vld [vmem:[%s2122_s21 + $0x3e8] sm:$0xff] }
  0xd3   : > { %1038 = vmatprep.mubr.f32.mxu1 %v434_v61  ;;  %v498_v61 = vld [vmem:[%s2122_s21 + $0x3f8] sm:$0xff] }
  0xd5   : > { %782 = vmatmul.mubr.f32.gmra.mxu0 %v431_v62  ;;  %v495_v62 = vld [vmem:[%s2122_s21 + $0x3e0] sm:$0xff] }
  0xd6   : > { %1039 = vmatmul.mubr.f32.gmra.mxu1 %v433_v63  ;;  %787 = vmatprep.mubr.f32.mxu0 %v436_v0  ;;  %v497_v63 = vld [vmem:[%s2122_s21 + $0x3f0] sm:$0xff]  ;;  %s2464_s21 = scalar_lea.hbm %s2580_s4, %s1555_s18 }
  0xd7   : > { %1044 = vmatprep.mubr.f32.mxu1 %v438_v1 }
  0xd9   : > { %788 = vmatmul.mubr.f32.gmra.mxu0 %v435_v2 }
  0xda   : > { %1045 = vmatmul.mubr.f32.gmra.mxu1 %v437_v3  ;;  %793 = vmatprep.mubr.f32.mxu0 %v440_v4 }
  0xdb   : > { %1050 = vmatprep.mubr.f32.mxu1 %v442_v5 }
  0xdd   : > { %794 = vmatmul.mubr.f32.gmra.mxu0 %v439_v6 }
  0xde   : > { %1051 = vmatmul.mubr.f32.gmra.mxu1 %v441_v7  ;;  %799 = vmatprep.mubr.f32.mxu0 %v444_v8 }
  0xdf   : > { %1056 = vmatprep.mubr.f32.mxu1 %v446_v9 }
  0xe1   : > { %800 = vmatmul.mubr.f32.gmra.mxu0 %v443_v10 }
  0xe2   : > { %1057 = vmatmul.mubr.f32.gmra.mxu1 %v445_v11  ;;  %805 = vmatprep.mubr.f32.mxu0 %v448_v12 }
  0xe3   : > { %1062 = vmatprep.mubr.f32.mxu1 %v450_v13 }
  0xe5   : > { %806 = vmatmul.mubr.f32.gmra.mxu0 %v447_v14 }
  0xe6   : > { %1063 = vmatmul.mubr.f32.gmra.mxu1 %v449_v15  ;;  %811 = vmatprep.mubr.f32.mxu0 %v452_v16 }
  0xe7   : > { %1068 = vmatprep.mubr.f32.mxu1 %v454_v17 }
  0xe9   : > { %812 = vmatmul.mubr.f32.gmra.mxu0 %v451_v18 }
  0xea   : > { %1069 = vmatmul.mubr.f32.gmra.mxu1 %v453_v19  ;;  %817 = vmatprep.mubr.f32.mxu0 %v456_v20 }
  0xeb   : > { %1074 = vmatprep.mubr.f32.mxu1 %v458_v21 }
  0xed   : > { %818 = vmatmul.mubr.f32.gmra.mxu0 %v455_v22 }
  0xee   : > { %1075 = vmatmul.mubr.f32.gmra.mxu1 %v457_v23  ;;  %823 = vmatprep.mubr.f32.mxu0 %v460_v24 }
  0xef   : > { %1080 = vmatprep.mubr.f32.mxu1 %v462_v25 }
  0xf1   : > { %824 = vmatmul.mubr.f32.gmra.mxu0 %v459_v26 }
  0xf2   : > { %1081 = vmatmul.mubr.f32.gmra.mxu1 %v461_v27  ;;  %829 = vmatprep.mubr.f32.mxu0 %v464_v28 }
  0xf3   : > { %1086 = vmatprep.mubr.f32.mxu1 %v466_v29 }
  0xf5   : > { %830 = vmatmul.mubr.f32.gmra.mxu0 %v463_v30 }
  0xf6   : > { %1087 = vmatmul.mubr.f32.gmra.mxu1 %v465_v31  ;;  %835 = vmatprep.mubr.f32.mxu0 %v468_v32 }
  0xf7   : > { %1092 = vmatprep.mubr.f32.mxu1 %v470_v33 }
  0xf9   : > { %836 = vmatmul.mubr.f32.gmra.mxu0 %v467_v34 }
  0xfa   : > { %1093 = vmatmul.mubr.f32.gmra.mxu1 %v469_v35  ;;  %841 = vmatprep.mubr.f32.mxu0 %v472_v36 }
  0xfb   : > { %1098 = vmatprep.mubr.f32.mxu1 %v474_v37 }
  0xfd   : > { %842 = vmatmul.mubr.f32.gmra.mxu0 %v471_v38 }
  0xfe   : > { %1099 = vmatmul.mubr.f32.gmra.mxu1 %v473_v39  ;;  %847 = vmatprep.mubr.f32.mxu0 %v476_v40 }
  0xff   : > { %1104 = vmatprep.mubr.f32.mxu1 %v478_v41 }
 0x101   : > { %848 = vmatmul.mubr.f32.gmra.mxu0 %v475_v42 }
 0x102   : > { %1105 = vmatmul.mubr.f32.gmra.mxu1 %v477_v43  ;;  %853 = vmatprep.mubr.f32.mxu0 %v480_v44 }
 0x103   : > { %1110 = vmatprep.mubr.f32.mxu1 %v482_v45 }
 0x105   : > { %854 = vmatmul.mubr.f32.gmra.mxu0 %v479_v46 }
 0x106   : > { %1111 = vmatmul.mubr.f32.gmra.mxu1 %v481_v47  ;;  %859 = vmatprep.mubr.f32.mxu0 %v484_v48 }
 0x107   : > { %1116 = vmatprep.mubr.f32.mxu1 %v486_v49 }
 0x109   : > { %860 = vmatmul.mubr.f32.gmra.mxu0 %v483_v50 }
 0x10a   : > { %1117 = vmatmul.mubr.f32.gmra.mxu1 %v485_v51  ;;  %865 = vmatprep.mubr.f32.mxu0 %v488_v52 }
 0x10b   : > { %1122 = vmatprep.mubr.f32.mxu1 %v490_v53 }
 0x10d   : > { %866 = vmatmul.mubr.f32.gmra.mxu0 %v487_v54 }
 0x10e   : > { %1123 = vmatmul.mubr.f32.gmra.mxu1 %v489_v55  ;;  %871 = vmatprep.mubr.f32.mxu0 %v492_v56 }
 0x10f   : > { %1128 = vmatprep.mubr.f32.mxu1 %v494_v57 }
 0x111   : > { %872 = vmatmul.mubr.f32.gmra.mxu0 %v491_v58 }
 0x112   : > { %1129 = vmatmul.mubr.f32.gmra.mxu1 %v493_v59  ;;  %877 = vmatprep.mubr.f32.mxu0 %v496_v60 }
 0x113   : > { %1134 = vmatprep.mubr.f32.mxu1 %v498_v61 }
 0x115   : > { %878 = vmatmul.mubr.f32.gmra.mxu0 %v495_v62 }
 0x116   : > { %1135 = vmatmul.mubr.f32.gmra.mxu1 %v497_v63 }
 0x159   : > { %v693_v0 = vpop.f32.mrf.mxu0 }
 0x15a   : > { %v950_v1 = vpop.f32.mrf.mxu1 }
 0x15b   : > { %v951_v2 = vadd.f32 %v950_v1, %v693_v0  ;;  %v695_v3 = vpop.f32.mrf.mxu0 }
 0x15c   : > { %v952_v4 = vpop.f32.mrf.mxu1 }
 0x15d   : > { %1336 = vst [vmem:[%s2394_s12] sm:$0xff] %v951_v2  ;;  %v953_v5 = vadd.f32 %v952_v4, %v695_v3  ;;  %v699_v6 = vpop.f32.mrf.mxu0 }
 0x15e   : > { %v956_v7 = vpop.f32.mrf.mxu1 }
 0x15f   : > { %1337 = vst [vmem:[%s2394_s12 + $0x8] sm:$0xff] %v953_v5  ;;  %v957_v8 = vadd.f32 %v956_v7, %v699_v6  ;;  %v701_v9 = vpop.f32.mrf.mxu0 }
 0x160   : > { %v958_v10 = vpop.f32.mrf.mxu1 }
 0x161   : > { %1338 = vst [vmem:[%s2394_s12 + $0x10] sm:$0xff] %v957_v8  ;;  %v959_v11 = vadd.f32 %v958_v10, %v701_v9  ;;  %v705_v12 = vpop.f32.mrf.mxu0 }
 0x162   : > { %v962_v13 = vpop.f32.mrf.mxu1 }
 0x163   : > { %1339 = vst [vmem:[%s2394_s12 + $0x18] sm:$0xff] %v959_v11  ;;  %v963_v14 = vadd.f32 %v962_v13, %v705_v12  ;;  %v707_v15 = vpop.f32.mrf.mxu0 }
 0x164   : > { %v964_v16 = vpop.f32.mrf.mxu1 }
 0x165   : > { %1340 = vst [vmem:[%s2394_s12 + $0x20] sm:$0xff] %v963_v14  ;;  %v965_v17 = vadd.f32 %v964_v16, %v707_v15  ;;  %v711_v18 = vpop.f32.mrf.mxu0 }
 0x166   : > { %v968_v19 = vpop.f32.mrf.mxu1 }
 0x167   : > { %1341 = vst [vmem:[%s2394_s12 + $0x28] sm:$0xff] %v965_v17  ;;  %v969_v20 = vadd.f32 %v968_v19, %v711_v18  ;;  %v713_v21 = vpop.f32.mrf.mxu0 }
 0x168   : > { %v970_v22 = vpop.f32.mrf.mxu1 }
 0x169   : > { %1342 = vst [vmem:[%s2394_s12 + $0x30] sm:$0xff] %v969_v20  ;;  %v971_v23 = vadd.f32 %v970_v22, %v713_v21  ;;  %v717_v24 = vpop.f32.mrf.mxu0 }
 0x16a   : > { %v974_v25 = vpop.f32.mrf.mxu1 }
 0x16b   : > { %1343 = vst [vmem:[%s2394_s12 + $0x38] sm:$0xff] %v971_v23  ;;  %v975_v26 = vadd.f32 %v974_v25, %v717_v24  ;;  %v719_v27 = vpop.f32.mrf.mxu0 }
 0x16c   : > { %v976_v28 = vpop.f32.mrf.mxu1 }
 0x16d   : > { %1344 = vst [vmem:[%s2394_s12 + $0x40] sm:$0xff] %v975_v26  ;;  %v977_v29 = vadd.f32 %v976_v28, %v719_v27  ;;  %v723_v30 = vpop.f32.mrf.mxu0 }
 0x16e   : > { %v980_v31 = vpop.f32.mrf.mxu1 }
 0x16f   : > { %1345 = vst [vmem:[%s2394_s12 + $0x48] sm:$0xff] %v977_v29  ;;  %v981_v32 = vadd.f32 %v980_v31, %v723_v30  ;;  %v725_v33 = vpop.f32.mrf.mxu0 }
 0x170   : > { %v982_v34 = vpop.f32.mrf.mxu1 }
 0x171   : > { %1346 = vst [vmem:[%s2394_s12 + $0x50] sm:$0xff] %v981_v32  ;;  %v983_v35 = vadd.f32 %v982_v34, %v725_v33  ;;  %v729_v36 = vpop.f32.mrf.mxu0 }
 0x172   : > { %v986_v37 = vpop.f32.mrf.mxu1 }
 0x173   : > { %1347 = vst [vmem:[%s2394_s12 + $0x58] sm:$0xff] %v983_v35  ;;  %v987_v38 = vadd.f32 %v986_v37, %v729_v36  ;;  %v731_v39 = vpop.f32.mrf.mxu0 }
 0x174   : > { %v988_v40 = vpop.f32.mrf.mxu1 }
 0x175   : > { %1348 = vst [vmem:[%s2394_s12 + $0x60] sm:$0xff] %v987_v38  ;;  %v989_v41 = vadd.f32 %v988_v40, %v731_v39  ;;  %v735_v42 = vpop.f32.mrf.mxu0 }
 0x176   : > { %v992_v43 = vpop.f32.mrf.mxu1 }
 0x177   : > { %1349 = vst [vmem:[%s2394_s12 + $0x68] sm:$0xff] %v989_v41  ;;  %v993_v44 = vadd.f32 %v992_v43, %v735_v42  ;;  %v737_v45 = vpop.f32.mrf.mxu0 }
 0x178   : > { %v994_v46 = vpop.f32.mrf.mxu1 }
 0x179   : > { %1350 = vst [vmem:[%s2394_s12 + $0x70] sm:$0xff] %v993_v44  ;;  %v995_v47 = vadd.f32 %v994_v46, %v737_v45  ;;  %v741_v48 = vpop.f32.mrf.mxu0 }
 0x17a   : > { %v998_v49 = vpop.f32.mrf.mxu1 }
 0x17b   : > { %1351 = vst [vmem:[%s2394_s12 + $0x78] sm:$0xff] %v995_v47  ;;  %v999_v50 = vadd.f32 %v998_v49, %v741_v48  ;;  %v743_v51 = vpop.f32.mrf.mxu0 }
 0x17c   : > { %v1000_v52 = vpop.f32.mrf.mxu1 }
 0x17d   : > { %1352 = vst [vmem:[%s2394_s12 + $0x80] sm:$0xff] %v999_v50  ;;  %v1001_v53 = vadd.f32 %v1000_v52, %v743_v51  ;;  %v747_v54 = vpop.f32.mrf.mxu0 }
 0x17e   : > { %v1004_v55 = vpop.f32.mrf.mxu1 }
 0x17f   : > { %1353 = vst [vmem:[%s2394_s12 + $0x88] sm:$0xff] %v1001_v53  ;;  %v1005_v56 = vadd.f32 %v1004_v55, %v747_v54  ;;  %v749_v57 = vpop.f32.mrf.mxu0 }
 0x180   : > { %v1006_v58 = vpop.f32.mrf.mxu1 }
 0x181   : > { %1354 = vst [vmem:[%s2394_s12 + $0x90] sm:$0xff] %v1005_v56  ;;  %v1007_v59 = vadd.f32 %v1006_v58, %v749_v57  ;;  %v753_v60 = vpop.f32.mrf.mxu0 }
 0x182   : > { %v1010_v61 = vpop.f32.mrf.mxu1 }
 0x183   : > { %1355 = vst [vmem:[%s2394_s12 + $0x98] sm:$0xff] %v1007_v59  ;;  %v1011_v62 = vadd.f32 %v1010_v61, %v753_v60  ;;  %v755_v63 = vpop.f32.mrf.mxu0 }
 0x184   : > { %v1012_v0 = vpop.f32.mrf.mxu1 }
 0x185   : > { %1356 = vst [vmem:[%s2394_s12 + $0xa0] sm:$0xff] %v1011_v62  ;;  %v1013_v1 = vadd.f32 %v1012_v0, %v755_v63  ;;  %v759_v2 = vpop.f32.mrf.mxu0 }
 0x186   : > { %v1016_v3 = vpop.f32.mrf.mxu1 }
 0x187   : > { %1357 = vst [vmem:[%s2394_s12 + $0xa8] sm:$0xff] %v1013_v1  ;;  %v1017_v4 = vadd.f32 %v1016_v3, %v759_v2  ;;  %v761_v5 = vpop.f32.mrf.mxu0 }
 0x188   : > { %v1018_v6 = vpop.f32.mrf.mxu1 }
 0x189   : > { %1358 = vst [vmem:[%s2394_s12 + $0xb0] sm:$0xff] %v1017_v4  ;;  %v1019_v7 = vadd.f32 %v1018_v6, %v761_v5  ;;  %v765_v8 = vpop.f32.mrf.mxu0 }
 0x18a   : > { %v1022_v9 = vpop.f32.mrf.mxu1 }
 0x18b   : > { %1359 = vst [vmem:[%s2394_s12 + $0xb8] sm:$0xff] %v1019_v7  ;;  %v1023_v10 = vadd.f32 %v1022_v9, %v765_v8  ;;  %v767_v11 = vpop.f32.mrf.mxu0 }
 0x18c   : > { %v1024_v12 = vpop.f32.mrf.mxu1 }
 0x18d   : > { %1360 = vst [vmem:[%s2394_s12 + $0xc0] sm:$0xff] %v1023_v10  ;;  %v1025_v13 = vadd.f32 %v1024_v12, %v767_v11  ;;  %v771_v14 = vpop.f32.mrf.mxu0 }
 0x18e   : > { %v1028_v15 = vpop.f32.mrf.mxu1 }
 0x18f   : > { %1361 = vst [vmem:[%s2394_s12 + $0xc8] sm:$0xff] %v1025_v13  ;;  %v1029_v16 = vadd.f32 %v1028_v15, %v771_v14  ;;  %v773_v17 = vpop.f32.mrf.mxu0 }
 0x190   : > { %v1030_v18 = vpop.f32.mrf.mxu1 }
 0x191   : > { %1362 = vst [vmem:[%s2394_s12 + $0xd0] sm:$0xff] %v1029_v16  ;;  %v1031_v19 = vadd.f32 %v1030_v18, %v773_v17  ;;  %v777_v20 = vpop.f32.mrf.mxu0 }
 0x192   : > { %v1034_v21 = vpop.f32.mrf.mxu1 }
 0x193   : > { %1363 = vst [vmem:[%s2394_s12 + $0xd8] sm:$0xff] %v1031_v19  ;;  %v1035_v22 = vadd.f32 %v1034_v21, %v777_v20  ;;  %v779_v23 = vpop.f32.mrf.mxu0 }
 0x194   : > { %v1036_v24 = vpop.f32.mrf.mxu1 }
 0x195   : > { %1364 = vst [vmem:[%s2394_s12 + $0xe0] sm:$0xff] %v1035_v22  ;;  %v1037_v25 = vadd.f32 %v1036_v24, %v779_v23  ;;  %v783_v26 = vpop.f32.mrf.mxu0 }
 0x196   : > { %v1040_v27 = vpop.f32.mrf.mxu1 }
 0x197   : > { %1365 = vst [vmem:[%s2394_s12 + $0xe8] sm:$0xff] %v1037_v25  ;;  %v1041_v28 = vadd.f32 %v1040_v27, %v783_v26  ;;  %v785_v29 = vpop.f32.mrf.mxu0 }
 0x198   : > { %v1042_v30 = vpop.f32.mrf.mxu1 }
 0x199   : > { %1366 = vst [vmem:[%s2394_s12 + $0xf0] sm:$0xff] %v1041_v28  ;;  %v1043_v31 = vadd.f32 %v1042_v30, %v785_v29  ;;  %v789_v32 = vpop.f32.mrf.mxu0 }
 0x19a   : > { %v1046_v33 = vpop.f32.mrf.mxu1 }
 0x19b   : > { %1367 = vst [vmem:[%s2394_s12 + $0xf8] sm:$0xff] %v1043_v31  ;;  %v1047_v34 = vadd.f32 %v1046_v33, %v789_v32  ;;  %v791_v35 = vpop.f32.mrf.mxu0 }
 0x19c   : > { %v1048_v36 = vpop.f32.mrf.mxu1 }
 0x19d   : > { %1368 = vst [vmem:[%s2394_s12 + $0x100] sm:$0xff] %v1047_v34  ;;  %v1049_v37 = vadd.f32 %v1048_v36, %v791_v35  ;;  %v795_v38 = vpop.f32.mrf.mxu0 }
 0x19e   : > { %v1052_v39 = vpop.f32.mrf.mxu1 }
 0x19f   : > { %1369 = vst [vmem:[%s2394_s12 + $0x108] sm:$0xff] %v1049_v37  ;;  %v1053_v40 = vadd.f32 %v1052_v39, %v795_v38  ;;  %v797_v41 = vpop.f32.mrf.mxu0 }
 0x1a0   : > { %v1054_v42 = vpop.f32.mrf.mxu1 }
 0x1a1   : > { %1370 = vst [vmem:[%s2394_s12 + $0x110] sm:$0xff] %v1053_v40  ;;  %v1055_v43 = vadd.f32 %v1054_v42, %v797_v41  ;;  %v801_v44 = vpop.f32.mrf.mxu0 }
 0x1a2   : > { %v1058_v45 = vpop.f32.mrf.mxu1 }
 0x1a3   : > { %1371 = vst [vmem:[%s2394_s12 + $0x118] sm:$0xff] %v1055_v43  ;;  %v1059_v46 = vadd.f32 %v1058_v45, %v801_v44  ;;  %v803_v47 = vpop.f32.mrf.mxu0 }
 0x1a4   : > { %v1060_v48 = vpop.f32.mrf.mxu1 }
 0x1a5   : > { %1372 = vst [vmem:[%s2394_s12 + $0x120] sm:$0xff] %v1059_v46  ;;  %v1061_v49 = vadd.f32 %v1060_v48, %v803_v47  ;;  %v807_v50 = vpop.f32.mrf.mxu0 }
 0x1a6   : > { %v1064_v51 = vpop.f32.mrf.mxu1 }
 0x1a7   : > { %1373 = vst [vmem:[%s2394_s12 + $0x128] sm:$0xff] %v1061_v49  ;;  %v1065_v52 = vadd.f32 %v1064_v51, %v807_v50  ;;  %v809_v53 = vpop.f32.mrf.mxu0 }
 0x1a8   : > { %v1066_v54 = vpop.f32.mrf.mxu1 }
 0x1a9   : > { %1374 = vst [vmem:[%s2394_s12 + $0x130] sm:$0xff] %v1065_v52  ;;  %v1067_v55 = vadd.f32 %v1066_v54, %v809_v53  ;;  %v813_v56 = vpop.f32.mrf.mxu0 }
 0x1aa   : > { %v1070_v57 = vpop.f32.mrf.mxu1 }
 0x1ab   : > { %1375 = vst [vmem:[%s2394_s12 + $0x138] sm:$0xff] %v1067_v55  ;;  %v1071_v58 = vadd.f32 %v1070_v57, %v813_v56  ;;  %v815_v59 = vpop.f32.mrf.mxu0 }
 0x1ac   : > { %v1072_v60 = vpop.f32.mrf.mxu1 }
 0x1ad   : > { %1376 = vst [vmem:[%s2394_s12 + $0x140] sm:$0xff] %v1071_v58  ;;  %v1073_v61 = vadd.f32 %v1072_v60, %v815_v59  ;;  %v819_v62 = vpop.f32.mrf.mxu0 }
 0x1ae   : > { %v1076_v63 = vpop.f32.mrf.mxu1 }
 0x1af   : > { %1377 = vst [vmem:[%s2394_s12 + $0x148] sm:$0xff] %v1073_v61  ;;  %v1077_v0 = vadd.f32 %v1076_v63, %v819_v62  ;;  %v821_v1 = vpop.f32.mrf.mxu0 }
 0x1b0   : > { %v1078_v2 = vpop.f32.mrf.mxu1 }
 0x1b1   : > { %1378 = vst [vmem:[%s2394_s12 + $0x150] sm:$0xff] %v1077_v0  ;;  %v1079_v3 = vadd.f32 %v1078_v2, %v821_v1  ;;  %v825_v4 = vpop.f32.mrf.mxu0 }
 0x1b2   : > { %v1082_v5 = vpop.f32.mrf.mxu1 }
 0x1b3   : > { %1379 = vst [vmem:[%s2394_s12 + $0x158] sm:$0xff] %v1079_v3  ;;  %v1083_v6 = vadd.f32 %v1082_v5, %v825_v4  ;;  %v827_v7 = vpop.f32.mrf.mxu0 }
 0x1b4   : > { %v1084_v8 = vpop.f32.mrf.mxu1 }
 0x1b5   : > { %1380 = vst [vmem:[%s2394_s12 + $0x160] sm:$0xff] %v1083_v6  ;;  %v1085_v9 = vadd.f32 %v1084_v8, %v827_v7  ;;  %v831_v10 = vpop.f32.mrf.mxu0 }
 0x1b6   : > { %v1088_v11 = vpop.f32.mrf.mxu1 }
 0x1b7   : > { %1381 = vst [vmem:[%s2394_s12 + $0x168] sm:$0xff] %v1085_v9  ;;  %v1089_v12 = vadd.f32 %v1088_v11, %v831_v10  ;;  %v833_v13 = vpop.f32.mrf.mxu0 }
 0x1b8   : > { %v1090_v14 = vpop.f32.mrf.mxu1 }
 0x1b9   : > { %1382 = vst [vmem:[%s2394_s12 + $0x170] sm:$0xff] %v1089_v12  ;;  %v1091_v15 = vadd.f32 %v1090_v14, %v833_v13  ;;  %v837_v16 = vpop.f32.mrf.mxu0 }
 0x1ba   : > { %v1094_v17 = vpop.f32.mrf.mxu1 }
 0x1bb   : > { %1383 = vst [vmem:[%s2394_s12 + $0x178] sm:$0xff] %v1091_v15  ;;  %v1095_v18 = vadd.f32 %v1094_v17, %v837_v16  ;;  %v839_v19 = vpop.f32.mrf.mxu0 }
 0x1bc   : > { %v1096_v20 = vpop.f32.mrf.mxu1 }
 0x1bd   : > { %1384 = vst [vmem:[%s2394_s12 + $0x180] sm:$0xff] %v1095_v18  ;;  %v1097_v21 = vadd.f32 %v1096_v20, %v839_v19  ;;  %v843_v22 = vpop.f32.mrf.mxu0 }
 0x1be   : > { %v1100_v23 = vpop.f32.mrf.mxu1 }
 0x1bf   : > { %1385 = vst [vmem:[%s2394_s12 + $0x188] sm:$0xff] %v1097_v21  ;;  %v1101_v24 = vadd.f32 %v1100_v23, %v843_v22  ;;  %v845_v25 = vpop.f32.mrf.mxu0 }
 0x1c0   : > { %v1102_v26 = vpop.f32.mrf.mxu1 }
 0x1c1   : > { %1386 = vst [vmem:[%s2394_s12 + $0x190] sm:$0xff] %v1101_v24  ;;  %v1103_v27 = vadd.f32 %v1102_v26, %v845_v25  ;;  %v849_v28 = vpop.f32.mrf.mxu0 }
 0x1c2   : > { %v1106_v29 = vpop.f32.mrf.mxu1 }
 0x1c3   : > { %1387 = vst [vmem:[%s2394_s12 + $0x198] sm:$0xff] %v1103_v27  ;;  %v1107_v30 = vadd.f32 %v1106_v29, %v849_v28  ;;  %v851_v31 = vpop.f32.mrf.mxu0 }
 0x1c4   : > { %v1108_v32 = vpop.f32.mrf.mxu1 }
 0x1c5   : > { %1388 = vst [vmem:[%s2394_s12 + $0x1a0] sm:$0xff] %v1107_v30  ;;  %v1109_v33 = vadd.f32 %v1108_v32, %v851_v31  ;;  %v855_v34 = vpop.f32.mrf.mxu0 }
 0x1c6   : > { %v1112_v35 = vpop.f32.mrf.mxu1 }
 0x1c7   : > { %1389 = vst [vmem:[%s2394_s12 + $0x1a8] sm:$0xff] %v1109_v33  ;;  %v1113_v36 = vadd.f32 %v1112_v35, %v855_v34  ;;  %v857_v37 = vpop.f32.mrf.mxu0 }
 0x1c8   : > { %v1114_v38 = vpop.f32.mrf.mxu1 }
 0x1c9   : > { %1390 = vst [vmem:[%s2394_s12 + $0x1b0] sm:$0xff] %v1113_v36  ;;  %v1115_v39 = vadd.f32 %v1114_v38, %v857_v37  ;;  %v861_v40 = vpop.f32.mrf.mxu0 }
 0x1ca   : > { %v1118_v41 = vpop.f32.mrf.mxu1 }
 0x1cb   : > { %1391 = vst [vmem:[%s2394_s12 + $0x1b8] sm:$0xff] %v1115_v39  ;;  %v1119_v42 = vadd.f32 %v1118_v41, %v861_v40  ;;  %v863_v43 = vpop.f32.mrf.mxu0 }
 0x1cc   : > { %v1120_v44 = vpop.f32.mrf.mxu1 }
 0x1cd   : > { %1392 = vst [vmem:[%s2394_s12 + $0x1c0] sm:$0xff] %v1119_v42  ;;  %v1121_v45 = vadd.f32 %v1120_v44, %v863_v43  ;;  %v867_v46 = vpop.f32.mrf.mxu0 }
 0x1ce   : > { %v1124_v47 = vpop.f32.mrf.mxu1 }
 0x1cf   : > { %1393 = vst [vmem:[%s2394_s12 + $0x1c8] sm:$0xff] %v1121_v45  ;;  %v1125_v48 = vadd.f32 %v1124_v47, %v867_v46  ;;  %v869_v49 = vpop.f32.mrf.mxu0 }
 0x1d0   : > { %v1126_v50 = vpop.f32.mrf.mxu1 }
 0x1d1   : > { %1394 = vst [vmem:[%s2394_s12 + $0x1d0] sm:$0xff] %v1125_v48  ;;  %v1127_v51 = vadd.f32 %v1126_v50, %v869_v49  ;;  %v873_v52 = vpop.f32.mrf.mxu0 }
 0x1d2   : > { %v1130_v53 = vpop.f32.mrf.mxu1 }
 0x1d3   : > { %1395 = vst [vmem:[%s2394_s12 + $0x1d8] sm:$0xff] %v1127_v51  ;;  %v1131_v54 = vadd.f32 %v1130_v53, %v873_v52  ;;  %v875_v55 = vpop.f32.mrf.mxu0 }
 0x1d4   : > { %v1132_v56 = vpop.f32.mrf.mxu1 }
 0x1d5   : > { %1396 = vst [vmem:[%s2394_s12 + $0x1e0] sm:$0xff] %v1131_v54  ;;  %v1133_v57 = vadd.f32 %v1132_v56, %v875_v55  ;;  %v879_v58 = vpop.f32.mrf.mxu0 }
 0x1d6   : > { %v1136_v59 = vpop.f32.mrf.mxu1 }
 0x1d7   : > { %1397 = vst [vmem:[%s2394_s12 + $0x1e8] sm:$0xff] %v1133_v57  ;;  %v1137_v60 = vadd.f32 %v1136_v59, %v879_v58  ;;  %v881_v61 = vpop.f32.mrf.mxu0 }
 0x1d8   : > { %v1138_v62 = vpop.f32.mrf.mxu1 }
 0x1d9   : > { %1398 = vst [vmem:[%s2394_s12 + $0x1f0] sm:$0xff] %v1137_v60  ;;  %v1139_v63 = vadd.f32 %v1138_v62, %v881_v61 }
 0x1db   : > { %1399 = vst [vmem:[%s2394_s12 + $0x1f8] sm:$0xff] %v1139_v63 }
 0x1dc   : > { %1770 = shalt.err (!%p1767_p4)
}
 0x1dd   : > { %s1771_s28 = scalar_lea.hbm %s2464_s21, 8192  ;;  %s1775_s29 = scalar_lea.hbm %s2580_s4, 65536 }
 0x1de   : > { %p1772_p5 = scmp.ne.s32.totalorder %s2464_s21, %s1771_s28  ;;  %p1776_p3 = scmp.lt.s32.totalorder %s2464_s21, %s2580_s4 }
 0x1df   : > { %p1777_p13 = scmp.lt.s32.totalorder %s1775_s29, %s1771_s28 }
 0x1e0   : > { %p1773_p10 = pnand %p1772_p5, %p2581_p7 }
 0x1e1   : > { %p1778_p0 = por %p1777_p13, %p1776_p3 }
 0x1e2   : > { %p1774_p12 = pneg %p1773_p10 }
 0x1e4   : > { %p1779_p6 = pnand %p1778_p0, %p1774_p12 }
 0x1e6   : > { %1782 = shalt.err (!%p1779_p6)
}
 0x1e7   : > { %s1915_s18 = smov 256   ;;  %s1916_s26 = smov 1024  }
 0x1e8   : > { %s1917_s3 = smov 16  }
 0x1e9   : > { %1566 = dma.vmem_to_hbm [thread:$0]  (%p2581_p7), %s2466_s30, 8192, %s2464_s21, %s2472_s23, %s1915_s18, %s1916_s26, %s1917_s3  }
 0x1ea PF: > { %p1580_p11 = scmp.ge.s32.totalorder %s1905_s22, 2  ;;  %s1432_s5 = sand.u32 1, %s1853_s9  }
 0x1eb   : > { %p2582_p8 = scmp.ne.s32.totalorder %s2576_s27, 0  ;;  %s1433_s15 = scalar_lea.sflag [#allocation5], %s1432_s5 }
 0x1ed   : > { %p1576_p9 = pnand %p1580_p11, %p2582_p8 }
 0x1ef   : > { %p1577_p1 = pneg %p1576_p9 }
 0x1f1   : > { %1848 = dma.done.wait (%p1577_p1), %s1433_s15, 8192  }
 0x1f2   : > { %1850 = vsyncadd (%p1577_p1), %s1433_s15, 4294959104  ;;  %s21_s22 = sadd.s32 1, %s1905_s22   ;;  %s2584_s8 = sld [smem:[#allocation16_spill]] }
 0x1f3   : > { %p2500_p2 = scmp.ge.s32.totalorder %s21_s22, 10   ;;  %s2585_s19 = sld [smem:[#allocation13_spill]] }
 0x1f4   : > { %s2586_s27 = sld [smem:[#allocation14_spill]]  ;;  %s2588_s9 = smov %s1857_s10 }
 0x1f5   : > { %s2587_s21 = sld [smem:[#allocation15_spill]]  ;;  %s2589_s10 = smov %s1861_s11 }
 0x1f6   : > { %s2590_s11 = smov %s2096_s0  ;;  %s2591_s12 = smov %s1869_s13 }
 0x1f7   : > { %s2592_s13 = smov %s1873_s14  ;;  %s2594_s15 = smov %s1881_s16 }
 0x1f8   : > { %s2593_s14 = smov %s2584_s8  ;;  %s2595_s16 = smov %s1885_s17 }
 0x1f9   : > { %s2596_s17 = smov %s2093_s2  ;;  %s2597_s18 = smov %s1897_s20 }
 0x1fa   : > { %s2598_s20 = smov %s2586_s27  ;;  %20 = sbr.rel (!%p2500_p2) target bundleno = 15 (0xf), region = 94 }
 0x1ff   :  { %1438 = vsyncpa [#allocation4], 1 }
 0x200   :  { %1440 = vsyncpa [#allocation4 + $0x1], 1 }
 0x201   :  { %1441 = vsyncpa [#allocation7], 1 }
 0x202   :  { %1443 = vsyncpa [#allocation7 + $0x1], 1 }
 0x203   :  { %1444 = vsyncpa [#allocation5], 1 }
 0x204   :  { %1446 = vsyncpa [#allocation5 + $0x1], 1 }

</bundles_post_ra>
